<compile_context>
chip_gen: v5e
topology: v5e:2x2
jax: 0.10.0
libtpu: 0.0.40
codegen_flags: <defaults>
</compile_context>

<pallas_src>
import functools

import jax
import jax.numpy as jnp
from jax.experimental import pallas as pl
from jax.experimental.pallas import tpu as pltpu


def _mlp_kernel(x_ref, w1_ref, b1_ref, w3_ref, b3_ref, w5_ref, b5_ref, o_ref):
    # Layer 1: Linear(num_i, num_h) + ReLU.  MXU matmul with f32 accumulation;
    # bias-add / ReLU stay in f32 on the VPU (safe on v5e which has no bf16 VPU).
    h = jnp.dot(x_ref[...], w1_ref[...], preferred_element_type=jnp.float32)
    h = jnp.maximum(h + b1_ref[...], 0.0)
    # Layer 2: Linear(num_h, num_o) + ReLU.  Cast back to the weight dtype so
    # the MXU runs in bf16 when bf16 compute is selected.
    h = jnp.dot(h.astype(w3_ref.dtype), w3_ref[...],
                preferred_element_type=jnp.float32)
    h = jnp.maximum(h + b3_ref[...], 0.0)
    # Layer 3: Linear(num_o, num_p).
    out = jnp.dot(h.astype(w5_ref.dtype), w5_ref[...],
                  preferred_element_type=jnp.float32)
    out = out + b5_ref[...]
    o_ref[...] = out.astype(o_ref.dtype)


def _choose_block_m(B):
    """Largest batch tile that divides B while keeping grid >= 2.

    grid >= 2 lets the 'parallel' batch axis shard across v7x's two
    TensorCores; the resulting tiles (block_m x 32 activations, block_m x 16
    outputs, ~20 KiB of weights) are a few hundred KiB, far under every
    generation's VMEM limit even with double-buffering.
    """
    for bm in (2048, 1024, 512, 256, 128, 64, 32, 16, 8):
        if B % bm == 0 and B // bm >= 2:
            return bm
    return B


@functools.partial(jax.jit, static_argnames=("block_m", "compute_dtype"))
def mlp_forward(x, w1, b1, w3, b3, w5, b5, *, block_m=None,
                compute_dtype=jnp.bfloat16):
    B, num_i = x.shape
    num_h = w1.shape[1]
    num_o = w3.shape[1]
    num_p = w5.shape[1]

    if block_m is None:
        block_m = _choose_block_m(B)
    assert B % block_m == 0, "batch must be a multiple of block_m"
    grid = (B // block_m,)

    # Matmul operands in compute_dtype (bf16 halves the dominant x DMA bytes
    # on v6e/v7x); biases stay f32 because bias/ReLU run post-accumulate in f32.
    xc = x.astype(compute_dtype)
    w1c = w1.astype(compute_dtype)
    w3c = w3.astype(compute_dtype)
    w5c = w5.astype(compute_dtype)
    b1f = b1.astype(jnp.float32)
    b3f = b3.astype(jnp.float32)
    b5f = b5.astype(jnp.float32)

    # Weights / biases are small: keep the full tensors resident per grid step
    # (constant index_map => no re-DMA between steps); tile only the batch dim.
    in_specs = [
        pl.BlockSpec((block_m, num_i), lambda i: (i, 0)),   # x tile
        pl.BlockSpec((num_i, num_h), lambda i: (0, 0)),     # W1
        pl.BlockSpec((1, num_h), lambda i: (0, 0)),         # b1
        pl.BlockSpec((num_h, num_o), lambda i: (0, 0)),     # W3
        pl.BlockSpec((1, num_o), lambda i: (0, 0)),         # b3
        pl.BlockSpec((num_o, num_p), lambda i: (0, 0)),     # W5
        pl.BlockSpec((1, num_p), lambda i: (0, 0)),         # b5
    ]
    out_specs = pl.BlockSpec((block_m, num_p), lambda i: (i, 0))

    itemsize = jnp.dtype(compute_dtype).itemsize
    flops = 2 * B * (num_i * num_h + num_h * num_o + num_o * num_p)
    bytes_accessed = (
        B * num_i * itemsize                                   # x stream
        + B * num_p * 4                                        # output (f32)
        + (num_i * num_h + num_h * num_o + num_o * num_p) * itemsize
        + (num_h + num_o + num_p) * 4                          # biases (f32)
    )

    return pl.pallas_call(
        _mlp_kernel,
        out_shape=jax.ShapeDtypeStruct((B, num_p), jnp.float32),
        grid_spec=pltpu.PrefetchScalarGridSpec(
            num_scalar_prefetch=0,
            grid=grid,
            in_specs=in_specs,
            out_specs=out_specs,
        ),
        compiler_params=pltpu.CompilerParams(
            dimension_semantics=("parallel",),
        ),
        cost_estimate=pl.CostEstimate(
            flops=flops, transcendentals=0, bytes_accessed=bytes_accessed),
    )(xc, w1c, b1f, w3c, b3f, w5c, b5f)


def init_params(key, num_i, num_h, num_o, num_p, dtype=jnp.float32):
    """PyTorch nn.Linear-style init: U(-1/sqrt(fan_in), 1/sqrt(fan_in)).
    Weights returned as [in, out] (transposed vs. PyTorch's [out, in])."""
    ks = jax.random.split(key, 6)

    def linear(kw, kb, fan_in, fan_out):
        bound = 1.0 / jnp.sqrt(jnp.asarray(fan_in, dtype))
        w = jax.random.uniform(kw, (fan_in, fan_out), dtype, -bound, bound)
        b = jax.random.uniform(kb, (1, fan_out), dtype, -bound, bound)
        return w, b

    w1, b1 = linear(ks[0], ks[1], num_i, num_h)
    w3, b3 = linear(ks[2], ks[3], num_h, num_o)
    w5, b5 = linear(ks[4], ks[5], num_o, num_p)
    return w1, b1, w3, b3, w5, b5


def reference_forward(x, w1, b1, w3, b3, w5, b5):
    h = jnp.maximum(x @ w1 + b1, 0.0)
    h = jnp.maximum(h @ w3 + b3, 0.0)
    return h @ w5 + b5


if __name__ == "__main__":
    # Shapes consistent with the module's forward:
    #   x: [B, num_i], linear1: num_i->num_h, linear3: num_h->num_o, linear5: num_o->num_p
    B, num_i, num_h, num_o, num_p = 1024, 32, 64, 32, 16

    key = jax.random.PRNGKey(0)
    k_x, k_p = jax.random.split(key)
    x = jax.random.normal(k_x, (B, num_i), jnp.float32)
    params = init_params(k_p, num_i, num_h, num_o, num_p)

    ref = reference_forward(x, *params)

    # f32 compute path: tight check of the kernel logic.
    out_f32 = jax.block_until_ready(
        mlp_forward(x, *params, compute_dtype=jnp.float32))
    assert out_f32.shape == (B, num_p)
    assert jnp.allclose(out_f32, ref, atol=1e-5, rtol=1e-5), "f32 mismatch vs reference"

    # Default bf16 compute path (halves the dominant DMA bytes on v6e/v7x).
    out_bf16 = jax.block_until_ready(mlp_forward(x, *params))
    assert out_bf16.shape == (B, num_p)
    assert jnp.allclose(out_bf16, ref, atol=5e-2, rtol=5e-2), "bf16 mismatch vs reference"

    print("KERNEL_OK")
</pallas_src>

<mosaic_0001>
module attributes {stable_mosaic.version = 11 : i64} {
  func.func @_mlp_kernel(%arg0: i32, %arg1: memref<512x32xf32, #tpu.memory_space<vmem>>, %arg2: memref<32x64xf32, #tpu.memory_space<vmem>>, %arg3: memref<1x64xf32, #tpu.memory_space<vmem>>, %arg4: memref<64x32xf32, #tpu.memory_space<vmem>>, %arg5: memref<1x32xf32, #tpu.memory_space<vmem>>, %arg6: memref<32x16xf32, #tpu.memory_space<vmem>>, %arg7: memref<1x16xf32, #tpu.memory_space<vmem>>, %arg8: memref<512x16xf32, #tpu.memory_space<vmem>>) attributes {dimension_semantics = [#tpu.dimension_semantics<parallel>], iteration_bounds = array<i64: 2>, scalar_prefetch = 0 : i64, scratch_operands = 0 : i64, tpu.core_type = #tpu.core_type<tc>, window_params = [{transform_indices = @transform_0, window_bounds = array<i64: 512, 32>}, {pipeline_mode = #tpu.pipeline_mode<synchronous>, transform_indices = @transform_1, window_bounds = array<i64: 32, 64>}, {pipeline_mode = #tpu.pipeline_mode<synchronous>, transform_indices = @transform_2, window_bounds = array<i64: 1, 64>}, {pipeline_mode = #tpu.pipeline_mode<synchronous>, transform_indices = @transform_3, window_bounds = array<i64: 64, 32>}, {pipeline_mode = #tpu.pipeline_mode<synchronous>, transform_indices = @transform_4, window_bounds = array<i64: 1, 32>}, {pipeline_mode = #tpu.pipeline_mode<synchronous>, transform_indices = @transform_5, window_bounds = array<i64: 32, 16>}, {pipeline_mode = #tpu.pipeline_mode<synchronous>, transform_indices = @transform_6, window_bounds = array<i64: 1, 16>}, {transform_indices = @transform_7, window_bounds = array<i64: 512, 16>}]} {
    %c0 = arith.constant 0 : index
    %c0_0 = arith.constant 0 : index
    %0 = vector.load %arg1[%c0, %c0_0] : memref<512x32xf32, #tpu.memory_space<vmem>>, vector<512x32xf32>
    %c0_1 = arith.constant 0 : index
    %c0_2 = arith.constant 0 : index
    %1 = vector.load %arg2[%c0_1, %c0_2] : memref<32x64xf32, #tpu.memory_space<vmem>>, vector<32x64xf32>
    %cst = arith.constant dense<0.000000e+00> : vector<512x64xf32>
    %2 = tpu.matmul %0, %1, %cst {dimension_numbers = #tpu.dot_dimension_numbers<[1], [0], [0], [1], [0, 0, 1, 1], [], []>} : vector<512x32xf32>, vector<32x64xf32>, vector<512x64xf32> -> vector<512x64xf32>
    %c0_3 = arith.constant 0 : index
    %c0_4 = arith.constant 0 : index
    %3 = vector.load %arg3[%c0_3, %c0_4] : memref<1x64xf32, #tpu.memory_space<vmem>>, vector<1x64xf32>
    %4 = vector.broadcast %3 : vector<1x64xf32> to vector<512x64xf32>
    %5 = arith.addf %2, %4 : vector<512x64xf32>
    %cst_5 = arith.constant 0.000000e+00 : f32
    %6 = vector.broadcast %cst_5 : f32 to vector<512x64xf32>
    %7 = arith.maximumf %5, %6 : vector<512x64xf32>
    %c0_6 = arith.constant 0 : index
    %c0_7 = arith.constant 0 : index
    %8 = vector.load %arg4[%c0_6, %c0_7] : memref<64x32xf32, #tpu.memory_space<vmem>>, vector<64x32xf32>
    %cst_8 = arith.constant dense<0.000000e+00> : vector<512x32xf32>
    %9 = tpu.matmul %7, %8, %cst_8 {dimension_numbers = #tpu.dot_dimension_numbers<[1], [0], [0], [1], [0, 0, 1, 1], [], []>} : vector<512x64xf32>, vector<64x32xf32>, vector<512x32xf32> -> vector<512x32xf32>
    %c0_9 = arith.constant 0 : index
    %c0_10 = arith.constant 0 : index
    %10 = vector.load %arg5[%c0_9, %c0_10] : memref<1x32xf32, #tpu.memory_space<vmem>>, vector<1x32xf32>
    %11 = vector.broadcast %10 : vector<1x32xf32> to vector<512x32xf32>
    %12 = arith.addf %9, %11 : vector<512x32xf32>
    %cst_11 = arith.constant 0.000000e+00 : f32
    %13 = vector.broadcast %cst_11 : f32 to vector<512x32xf32>
    %14 = arith.maximumf %12, %13 : vector<512x32xf32>
    %c0_12 = arith.constant 0 : index
    %c0_13 = arith.constant 0 : index
    %15 = vector.load %arg6[%c0_12, %c0_13] : memref<32x16xf32, #tpu.memory_space<vmem>>, vector<32x16xf32>
    %cst_14 = arith.constant dense<0.000000e+00> : vector<512x16xf32>
    %16 = tpu.matmul %14, %15, %cst_14 {dimension_numbers = #tpu.dot_dimension_numbers<[1], [0], [0], [1], [0, 0, 1, 1], [], []>} : vector<512x32xf32>, vector<32x16xf32>, vector<512x16xf32> -> vector<512x16xf32>
    %c0_15 = arith.constant 0 : index
    %c0_16 = arith.constant 0 : index
    %17 = vector.load %arg7[%c0_15, %c0_16] : memref<1x16xf32, #tpu.memory_space<vmem>>, vector<1x16xf32>
    %18 = vector.broadcast %17 : vector<1x16xf32> to vector<512x16xf32>
    %19 = arith.addf %16, %18 : vector<512x16xf32>
    %c0_17 = arith.constant 0 : index
    %c0_18 = arith.constant 0 : index
    %20 = vector.load %arg8[%c0_17, %c0_18] : memref<512x16xf32, #tpu.memory_space<vmem>>, vector<512x16xf32>
    tpu.vector_store %arg8[%c0_17, %c0_18], %19 {strides = array<i32>} : memref<512x16xf32, #tpu.memory_space<vmem>>, vector<512x16xf32>,
    return
  }
  func.func @transform_0(%arg0: i32) -> (i32, i32) {
    %c0_i32 = arith.constant 0 : i32
    %c0_i32_0 = arith.constant 0 : i32
    return %arg0, %c0_i32 : i32, i32
  }
  func.func @transform_1(%arg0: i32) -> (i32, i32) {
    %c0_i32 = arith.constant 0 : i32
    %c0_i32_0 = arith.constant 0 : i32
    %c0_i32_1 = arith.constant 0 : i32
    return %c0_i32, %c0_i32_0 : i32, i32
  }
  func.func @transform_2(%arg0: i32) -> (i32, i32) {
    %c0_i32 = arith.constant 0 : i32
    %c0_i32_0 = arith.constant 0 : i32
    %c0_i32_1 = arith.constant 0 : i32
    return %c0_i32, %c0_i32_0 : i32, i32
  }
  func.func @transform_3(%arg0: i32) -> (i32, i32) {
    %c0_i32 = arith.constant 0 : i32
    %c0_i32_0 = arith.constant 0 : i32
    %c0_i32_1 = arith.constant 0 : i32
    return %c0_i32, %c0_i32_0 : i32, i32
  }
  func.func @transform_4(%arg0: i32) -> (i32, i32) {
    %c0_i32 = arith.constant 0 : i32
    %c0_i32_0 = arith.constant 0 : i32
    %c0_i32_1 = arith.constant 0 : i32
    return %c0_i32, %c0_i32_0 : i32, i32
  }
  func.func @transform_5(%arg0: i32) -> (i32, i32) {
    %c0_i32 = arith.constant 0 : i32
    %c0_i32_0 = arith.constant 0 : i32
    %c0_i32_1 = arith.constant 0 : i32
    return %c0_i32, %c0_i32_0 : i32, i32
  }
  func.func @transform_6(%arg0: i32) -> (i32, i32) {
    %c0_i32 = arith.constant 0 : i32
    %c0_i32_0 = arith.constant 0 : i32
    %c0_i32_1 = arith.constant 0 : i32
    return %c0_i32, %c0_i32_0 : i32, i32
  }
  func.func @transform_7(%arg0: i32) -> (i32, i32) {
    %c0_i32 = arith.constant 0 : i32
    %c0_i32_0 = arith.constant 0 : i32
    return %arg0, %c0_i32 : i32, i32
  }
}

</mosaic_0001>

<bundles_post_ra>
// kernel: mlp_forward.1
= control target key start
LH: loop header
LB: loop body
LE: loop exit
PB: predicated region body
PF: predicated region fallthrough
CT: control target
= control target key end

     0   :  { %s2109_s24 = smov 0   ;;  %s2800_s0 = inlined_call_operand.vmem [shape: f32[1024,32], index: 0, kind: input, shape index: {}]   ;;  %s2801_s1 = inlined_call_operand.vmem [shape: f32[32,64], index: 1, kind: input, shape index: {}]   ;;  %s2802_s2 = inlined_call_operand.vmem [shape: f32[1,64], index: 2, kind: input, shape index: {}]   ;;  %s2803_s3 = inlined_call_operand.vmem [shape: f32[64,32], index: 3, kind: input, shape index: {}]   ;;  %s2804_s4 = inlined_call_operand.vmem [shape: f32[1,32], index: 4, kind: input, shape index: {}]   ;;  %s2805_s5 = inlined_call_operand.vmem [shape: f32[32,16], index: 5, kind: input, shape index: {}]   ;;  %s2806_s6 = inlined_call_operand.vmem [shape: f32[1,16], index: 6, kind: input, shape index: {}]   ;;  %s2807_s7 = inlined_call_operand.vmem [shape: f32[1024,16], index: 7, kind: output, shape index: {}]  }
   0x1 LB: > { %s1828_s25 = sadd.s32 4294967295, %s2067_s24   ;;  %p1832_p0 = scmp.ge.s32.totalorder %s2067_s24, 1  ;;  %s2067_s24 = sphi %s2109_s24, %s17_s24  }
   0x2   : > { %p238_p1 = scmp.lt.s32.totalorder %s2067_s24, 3 }
   0x4   : > { %p239_p2 = pnand %p1832_p0, %p238_p1 }
   0x5   : > { %s1833_s30 = sshll.u32 (!%p239_p2), %s1828_s25, 6 }
   0x6   : > { %242 = sbr.rel (%p239_p2) target bundleno = 924 (0x39c), region = 48  ;;  %p271_p3 = scmp.lt.s32.totalorder (!%p239_p2), %s1833_s30, 127 }
   0xb   : > { %v349_v0 = vld [vmem:[%s2801_s1 + $0x18] sm:$0xff]  ;;  %v348_v1 = vld [vmem:[%s2801_s1 + $0x10] sm:$0xff]  ;;  %v347_v2 = vld [vmem:[%s2801_s1 + $0x8] sm:$0xff]  ;;  %s2809_s30 = smov (!%p271_p3, %s1833_s30), 127  ;;  %vm354_vm0 = vcmask 261120   ;;  %vm832_vm1 = vcmask 523264  }
   0xc   : > { %559 = vmatpush.msra.mxu0 %v349_v0  ;;  %2031 = vmatpush.msra.mxu3 %v349_v0  ;;  %v346_v3 = vld [vmem:[%s2801_s1] sm:$0xff]  ;;  %s1834_s12 = sshll.u32 %s2809_s30, 3  ;;  %v827_v15 = vld [vmem:[%s2803_s3 + $0x38] sm:$0xff]  ;;  %v826_v16 = vld [vmem:[%s2803_s3 + $0x30] sm:$0xff]  ;;  %vm1707_vm2 = vcmask 130048  }
   0xd   : > { %s2137_s15 = scalar_lea.vmem %s2800_s0, %s1834_s12  ;;  %1033 = vmatpush.msra.mxu1 %v827_v15  ;;  %v825_v17 = vld [vmem:[%s2803_s3 + $0x28] sm:$0xff]  ;;  %v824_v19 = vld [vmem:[%s2803_s3 + $0x20] sm:$0xff]  ;;  %v823_v20 = vld [vmem:[%s2803_s3 + $0x18] sm:$0xff]  ;;  %s2420_s8 = scalar_lea.vmem %s2807_s7, %s1834_s12 }
   0xe   : > { %560 = vmatpush.msra.mxu0 %v348_v1  ;;  %2032 = vmatpush.msra.mxu3 %v348_v1  ;;  %v282_v4 = vld [vmem:[%s2137_s15] sm:$0xff]  ;;  %v283_v5 = vld [vmem:[%s2137_s15 + $0x8] sm:$0xff]  ;;  %v284_v6 = vld [vmem:[%s2137_s15 + $0x10] sm:$0xff] }
   0xf   : > { %v285_v7 = vld [vmem:[%s2137_s15 + $0x18] sm:$0xff]  ;;  %v286_v8 = vld [vmem:[%s2137_s15 + $0x20] sm:$0xff]  ;;  %v287_v9 = vld [vmem:[%s2137_s15 + $0x28] sm:$0xff]  ;;  %1034 = vmatpush.msra.mxu1 %v826_v16 }
  0x10   : > { %561 = vmatpush.msra.mxu0 %v347_v2  ;;  %2033 = vmatpush.msra.mxu3 %v347_v2  ;;  %v288_v10 = vld [vmem:[%s2137_s15 + $0x30] sm:$0xff]  ;;  %v289_v11 = vld [vmem:[%s2137_s15 + $0x38] sm:$0xff]  ;;  %v290_v12 = vld [vmem:[%s2137_s15 + $0x40] sm:$0xff] }
  0x11   : > { %v291_v13 = vld [vmem:[%s2137_s15 + $0x48] sm:$0xff]  ;;  %v292_v14 = vld [vmem:[%s2137_s15 + $0x50] sm:$0xff]  ;;  %v293_v18 = vld [vmem:[%s2137_s15 + $0x58] sm:$0xff]  ;;  %1035 = vmatpush.msra.mxu1 %v825_v17 }
  0x12   : > { %562 = vmatpush.msra.mxu0 %v346_v3  ;;  %2034 = vmatpush.msra.mxu3 %v346_v3  ;;  %v822_v21 = vld [vmem:[%s2803_s3 + $0x10] sm:$0xff]  ;;  %v294_v22 = vld [vmem:[%s2137_s15 + $0x60] sm:$0xff]  ;;  %v821_v23 = vld [vmem:[%s2803_s3 + $0x8] sm:$0xff] }
  0x13   : > { %1837 = vmatmul.msk.f32.vlgmr.msra.gmra.mxu0 %vm354_vm0, %v282_v4  ;;  %1036 = vmatpush.msra.mxu1 %v824_v19  ;;  %v820_v24 = vld [vmem:[%s2803_s3] sm:$0xff]  ;;  %v295_v25 = vld [vmem:[%s2137_s15 + $0x68] sm:$0xff]  ;;  %v296_v26 = vld [vmem:[%s2137_s15 + $0x70] sm:$0xff] }
  0x14   : > { %2035 = vmatpush.msrb.mxu3 %v827_v15  ;;  %v297_v27 = vld [vmem:[%s2137_s15 + $0x78] sm:$0xff]  ;;  %v2198_v28 = vld [vmem:[%s2802_s2] ss:$0 sm:$0xff]  ;;  %v299_v34 = vld [vmem:[%s2137_s15 + $0x88] sm:$0xff] }
  0x15   : > { %1037 = vmatpush.msra.mxu1 %v823_v20  ;;  %v298_v30 = vld [vmem:[%s2137_s15 + $0x80] sm:$0xff]  ;;  %v300_v38 = vld [vmem:[%s2137_s15 + $0x90] sm:$0xff]  ;;  %v301_v42 = vld [vmem:[%s2137_s15 + $0x98] sm:$0xff] }
  0x16   : > { %2036 = vmatpush.msrb.mxu3 %v826_v16  ;;  %v302_v46 = vld [vmem:[%s2137_s15 + $0xa0] sm:$0xff]  ;;  %v303_v50 = vld [vmem:[%s2137_s15 + $0xa8] sm:$0xff]  ;;  %v304_v54 = vld [vmem:[%s2137_s15 + $0xb0] sm:$0xff] }
  0x17   : > { %1038 = vmatpush.msra.mxu1 %v822_v21  ;;  %v305_v58 = vld [vmem:[%s2137_s15 + $0xb8] sm:$0xff]  ;;  %v306_v62 = vld [vmem:[%s2137_s15 + $0xc0] sm:$0xff]  ;;  %v307_v2 = vld [vmem:[%s2137_s15 + $0xc8] sm:$0xff] }
  0x18   : > { %2037 = vmatpush.msrb.mxu3 %v825_v17  ;;  %v310_v15 = vld [vmem:[%s2137_s15 + $0xe0] sm:$0xff]  ;;  %v2259_v17 = vld [vmem:[%s2805_s5 + $0x10] sm:$0xff] }
  0x19   : > { %1039 = vmatpush.msra.mxu1 %v821_v23 }
  0x1a   : > { %2038 = vmatpush.msrb.mxu3 %v824_v19  ;;  %v2266_v19 = vld [vmem:[%s2805_s5 + $0x8] sm:$0xff] }
  0x1b   : > { %1838 = vmatmul.msk.f32.gmra.mxu0 %vm354_vm0, %v283_v5  ;;  %1040 = vmatpush.msra.mxu1 %v820_v24 }
  0x1c   : > { %2039 = vmatpush.msrb.mxu3 %v823_v20  ;;  %v2273_v20 = vld [vmem:[%s2805_s5] sm:$0xff] }
  0x1e   : > { %2040 = vmatpush.msrb.mxu3 %v822_v21 }
  0x20   : > { %2041 = vmatpush.msrb.mxu3 %v821_v23 }
  0x22   : > { %2042 = vmatpush.msrb.mxu3 %v820_v24 }
  0x23   : > { %1839 = vmatmul.msk.f32.gmra.mxu0 %vm354_vm0, %v284_v6  ;;  %v308_v6 = vld [vmem:[%s2137_s15 + $0xd0] sm:$0xff] }
  0x2b   : > { %1840 = vmatmul.msk.f32.gmra.mxu0 %vm354_vm0, %v285_v7 }
  0x33   : > { %1841 = vmatmul.msk.f32.gmra.mxu0 %vm354_vm0, %v286_v8 }
  0x3b   : > { %1842 = vmatmul.msk.f32.gmra.mxu0 %vm354_vm0, %v287_v9 }
  0x43   : > { %1843 = vmatmul.msk.f32.gmra.mxu0 %vm354_vm0, %v288_v10  ;;  %v309_v10 = vld [vmem:[%s2137_s15 + $0xd8] sm:$0xff] }
  0x4b   : > { %1844 = vmatmul.msk.f32.gmra.mxu0 %vm354_vm0, %v289_v11 }
  0x53   : > { %1845 = vmatmul.msk.f32.gmra.mxu0 %vm354_vm0, %v290_v12 }
  0x5b   : > { %1846 = vmatmul.msk.f32.gmra.mxu0 %vm354_vm0, %v291_v13  ;;  %v2251_v13 = vld [vmem:[%s2805_s5 + $0x18] sm:$0xff] }
  0x5c   : > { %1510 = vmatpush.msra.mxu2 %v2251_v13 }
  0x5e   : > { %1511 = vmatpush.msra.mxu2 %v2259_v17 }
  0x60   : > { %1512 = vmatpush.msra.mxu2 %v2266_v19 }
  0x62   : > { %1513 = vmatpush.msra.mxu2 %v2273_v20 }
  0x63   : > { %1847 = vmatmul.msk.f32.gmra.mxu0 %vm354_vm0, %v292_v14 }
  0x6b   : > { %1848 = vmatmul.msk.f32.gmra.mxu0 %vm354_vm0, %v293_v18 }
  0x73   : > { %1849 = vmatmul.msk.f32.gmra.mxu0 %vm354_vm0, %v294_v22  ;;  %v311_v22 = vld [vmem:[%s2137_s15 + $0xe8] sm:$0xff] }
  0x7b   : > { %1850 = vmatmul.msk.f32.gmra.mxu0 %vm354_vm0, %v295_v25 }
  0x83   : > { %1851 = vmatmul.msk.f32.gmra.mxu0 %vm354_vm0, %v296_v26  ;;  %v312_v26 = vld [vmem:[%s2137_s15 + $0xf0] sm:$0xff] }
  0x8b   : > { %1852 = vmatmul.msk.f32.gmra.mxu0 %vm354_vm0, %v297_v27 }
  0x90   : > { %v564_v29 = vpop.f32.mrf.mxu0 }
  0x91   : > { %v565_v31 = vadd.f32 %v2198_v28, %v564_v29 }
  0x93   : > { %v756_v32 = vmax.f32 %v565_v31, 0.0  ;;  %1853 = vmatmul.msk.f32.gmra.mxu0 %vm354_vm0, %v298_v30  ;;  %v313_v31 = vld [vmem:[%s2137_s15 + $0xf8] sm:$0xff] }
  0x95   : > { %1901 = vmatmul.msk.f32.vlgmr.msra.gmra.mxu1 %vm832_vm1, %v756_v32 }
  0x98   : > { %v567_v33 = vpop.f32.mrf.mxu0 }
  0x99   : > { %v568_v35 = vadd.f32 %v2198_v28, %v567_v33 }
  0x9b   : > { %v757_v36 = vmax.f32 %v568_v35, 0.0  ;;  %1854 = vmatmul.msk.f32.gmra.mxu0 %vm354_vm0, %v299_v34  ;;  %v2291_v34 = vld [vmem:[%s2804_s4] ss:$0 sm:$0xff] }
  0x9d   : > { %1902 = vmatmul.msk.f32.gmra.mxu1 %vm832_vm1, %v757_v36  ;;  %v314_v36 = vld [vmem:[%s2137_s15 + $0x100] sm:$0xff] }
  0xa0   : > { %v570_v37 = vpop.f32.mrf.mxu0 }
  0xa1   : > { %v571_v39 = vadd.f32 %v2198_v28, %v570_v37 }
  0xa3   : > { %v758_v40 = vmax.f32 %v571_v39, 0.0  ;;  %1855 = vmatmul.msk.f32.gmra.mxu0 %vm354_vm0, %v300_v38 }
  0xa5   : > { %1903 = vmatmul.msk.f32.gmra.mxu1 %vm832_vm1, %v758_v40 }
  0xa8   : > { %v573_v41 = vpop.f32.mrf.mxu0 }
  0xa9   : > { %v574_v43 = vadd.f32 %v2198_v28, %v573_v41 }
  0xab   : > { %v759_v44 = vmax.f32 %v574_v43, 0.0  ;;  %1856 = vmatmul.msk.f32.gmra.mxu0 %vm354_vm0, %v301_v42  ;;  %v315_v43 = vld [vmem:[%s2137_s15 + $0x108] sm:$0xff] }
  0xad   : > { %1904 = vmatmul.msk.f32.gmra.mxu1 %vm832_vm1, %v759_v44 }
  0xb0   : > { %v576_v45 = vpop.f32.mrf.mxu0 }
  0xb1   : > { %v577_v47 = vadd.f32 %v2198_v28, %v576_v45 }
  0xb3   : > { %v760_v48 = vmax.f32 %v577_v47, 0.0  ;;  %1857 = vmatmul.msk.f32.gmra.mxu0 %vm354_vm0, %v302_v46 }
  0xb5   : > { %1905 = vmatmul.msk.f32.gmra.mxu1 %vm832_vm1, %v760_v48 }
  0xb8   : > { %v579_v49 = vpop.f32.mrf.mxu0 }
  0xb9   : > { %v580_v51 = vadd.f32 %v2198_v28, %v579_v49 }
  0xbb   : > { %v761_v52 = vmax.f32 %v580_v51, 0.0  ;;  %1858 = vmatmul.msk.f32.gmra.mxu0 %vm354_vm0, %v303_v50  ;;  %v316_v50 = vld [vmem:[%s2137_s15 + $0x110] sm:$0xff] }
  0xbd   : > { %1906 = vmatmul.msk.f32.gmra.mxu1 %vm832_vm1, %v761_v52 }
  0xc0   : > { %v582_v53 = vpop.f32.mrf.mxu0 }
  0xc1   : > { %v583_v55 = vadd.f32 %v2198_v28, %v582_v53 }
  0xc3   : > { %v762_v56 = vmax.f32 %v583_v55, 0.0  ;;  %1859 = vmatmul.msk.f32.gmra.mxu0 %vm354_vm0, %v304_v54 }
  0xc5   : > { %1907 = vmatmul.msk.f32.gmra.mxu1 %vm832_vm1, %v762_v56 }
  0xc8   : > { %v585_v57 = vpop.f32.mrf.mxu0 }
  0xc9   : > { %v586_v59 = vadd.f32 %v2198_v28, %v585_v57  ;;  %v317_v57 = vld [vmem:[%s2137_s15 + $0x118] sm:$0xff] }
  0xcb   : > { %v763_v60 = vmax.f32 %v586_v59, 0.0  ;;  %1860 = vmatmul.msk.f32.gmra.mxu0 %vm354_vm0, %v305_v58 }
  0xcd   : > { %1908 = vmatmul.msk.f32.gmra.mxu1 %vm832_vm1, %v763_v60 }
  0xd0   : > { %v588_v61 = vpop.f32.mrf.mxu0 }
  0xd1   : > { %v589_v63 = vadd.f32 %v2198_v28, %v588_v61 }
  0xd3   : > { %v764_v0 = vmax.f32 %v589_v63, 0.0  ;;  %1861 = vmatmul.msk.f32.gmra.mxu0 %vm354_vm0, %v306_v62 }
  0xd5   : > { %1909 = vmatmul.msk.f32.gmra.mxu1 %vm832_vm1, %v764_v0  ;;  %v318_v0 = vld [vmem:[%s2137_s15 + $0x120] sm:$0xff] }
  0xd8   : > { %v591_v1 = vpop.f32.mrf.mxu0 }
  0xd9   : > { %v592_v3 = vadd.f32 %v2198_v28, %v591_v1 }
  0xdb   : > { %v765_v4 = vmax.f32 %v592_v3, 0.0  ;;  %1862 = vmatmul.msk.f32.gmra.mxu0 %vm354_vm0, %v307_v2 }
  0xdd   : > { %1910 = vmatmul.msk.f32.gmra.mxu1 %vm832_vm1, %v765_v4 }
  0xe0   : > { %v594_v5 = vpop.f32.mrf.mxu0 }
  0xe1   : > { %v595_v7 = vadd.f32 %v2198_v28, %v594_v5 }
  0xe3   : > { %v766_v8 = vmax.f32 %v595_v7, 0.0  ;;  %1863 = vmatmul.msk.f32.gmra.mxu0 %vm354_vm0, %v308_v6  ;;  %v319_v7 = vld [vmem:[%s2137_s15 + $0x128] sm:$0xff] }
  0xe5   : > { %1911 = vmatmul.msk.f32.gmra.mxu1 %vm832_vm1, %v766_v8 }
  0xe8   : > { %v597_v9 = vpop.f32.mrf.mxu0 }
  0xe9   : > { %v598_v11 = vadd.f32 %v2198_v28, %v597_v9 }
  0xeb   : > { %v767_v12 = vmax.f32 %v598_v11, 0.0  ;;  %1864 = vmatmul.msk.f32.gmra.mxu0 %vm354_vm0, %v309_v10 }
  0xed   : > { %1912 = vmatmul.msk.f32.gmra.mxu1 %vm832_vm1, %v767_v12 }
  0xf0   : > { %v600_v14 = vpop.f32.mrf.mxu0 }
  0xf1   : > { %v601_v16 = vadd.f32 %v2198_v28, %v600_v14 }
  0xf3   : > { %v768_v18 = vmax.f32 %v601_v16, 0.0  ;;  %1865 = vmatmul.msk.f32.gmra.mxu0 %vm354_vm0, %v310_v15  ;;  %v320_v15 = vld [vmem:[%s2137_s15 + $0x130] sm:$0xff] }
  0xf5   : > { %1913 = vmatmul.msk.f32.gmra.mxu1 %vm832_vm1, %v768_v18 }
  0xf8   : > { %v603_v21 = vpop.f32.mrf.mxu0 }
  0xf9   : > { %v604_v23 = vadd.f32 %v2198_v28, %v603_v21 }
  0xfb   : > { %v769_v24 = vmax.f32 %v604_v23, 0.0  ;;  %1866 = vmatmul.msk.f32.gmra.mxu0 %vm354_vm0, %v311_v22 }
  0xfd   : > { %1914 = vmatmul.msk.f32.gmra.mxu1 %vm832_vm1, %v769_v24 }
 0x100   : > { %v606_v25 = vpop.f32.mrf.mxu0 }
 0x101   : > { %v607_v27 = vadd.f32 %v2198_v28, %v606_v25  ;;  %v321_v25 = vld [vmem:[%s2137_s15 + $0x138] sm:$0xff] }
 0x103   : > { %v770_v29 = vmax.f32 %v607_v27, 0.0  ;;  %1867 = vmatmul.msk.f32.gmra.mxu0 %vm354_vm0, %v312_v26 }
 0x105   : > { %1915 = vmatmul.msk.f32.gmra.mxu1 %vm832_vm1, %v770_v29 }
 0x108   : > { %v609_v30 = vpop.f32.mrf.mxu0 }
 0x109   : > { %v610_v32 = vadd.f32 %v2198_v28, %v609_v30 }
 0x10b   : > { %v771_v33 = vmax.f32 %v610_v32, 0.0  ;;  %1868 = vmatmul.msk.f32.gmra.mxu0 %vm354_vm0, %v313_v31 }
 0x10d   : > { %1916 = vmatmul.msk.f32.gmra.mxu1 %vm832_vm1, %v771_v33  ;;  %v322_v33 = vld [vmem:[%s2137_s15 + $0x140] sm:$0xff] }
 0x110   : > { %v612_v35 = vpop.f32.mrf.mxu0 }
 0x111   : > { %v613_v37 = vadd.f32 %v2198_v28, %v612_v35 }
 0x112   : > { %v1042_v38 = vpop.f32.mrf.mxu1 }
 0x113   : > { %v772_v39 = vmax.f32 %v613_v37, 0.0  ;;  %v1043_v40 = vadd.f32 %v2291_v34, %v1042_v38  ;;  %1869 = vmatmul.msk.f32.gmra.mxu0 %vm354_vm0, %v314_v36 }
 0x115   : > { %v1234_v41 = vmax.f32 %v1043_v40, 0.0  ;;  %1917 = vmatmul.msk.f32.gmra.mxu1 %vm832_vm1, %v772_v39 }
 0x117   : > { %1965 = vmatmul.msk.f32.vlgmr.msra.gmra.mxu2 %vm354_vm0, %v1234_v41  ;;  %v323_v41 = vld [vmem:[%s2137_s15 + $0x148] sm:$0xff] }
 0x118   : > { %v615_v42 = vpop.f32.mrf.mxu0 }
 0x119   : > { %v616_v44 = vadd.f32 %v2198_v28, %v615_v42 }
 0x11a   : > { %v1045_v45 = vpop.f32.mrf.mxu1 }
 0x11b   : > { %v773_v46 = vmax.f32 %v616_v44, 0.0  ;;  %v1046_v47 = vadd.f32 %v2291_v34, %v1045_v45  ;;  %1870 = vmatmul.msk.f32.gmra.mxu0 %vm354_vm0, %v315_v43 }
 0x11d   : > { %v1235_v48 = vmax.f32 %v1046_v47, 0.0  ;;  %1918 = vmatmul.msk.f32.gmra.mxu1 %vm832_vm1, %v773_v46 }
 0x11f   : > { %1966 = vmatmul.msk.f32.gmra.mxu2 %vm354_vm0, %v1235_v48  ;;  %v324_v48 = vld [vmem:[%s2137_s15 + $0x150] sm:$0xff] }
 0x120   : > { %v618_v49 = vpop.f32.mrf.mxu0 }
 0x121   : > { %v619_v51 = vadd.f32 %v2198_v28, %v618_v49 }
 0x122   : > { %v1048_v52 = vpop.f32.mrf.mxu1 }
 0x123   : > { %v774_v53 = vmax.f32 %v619_v51, 0.0  ;;  %v1049_v54 = vadd.f32 %v2291_v34, %v1048_v52  ;;  %1871 = vmatmul.msk.f32.gmra.mxu0 %vm354_vm0, %v316_v50 }
 0x125   : > { %v1236_v55 = vmax.f32 %v1049_v54, 0.0  ;;  %1919 = vmatmul.msk.f32.gmra.mxu1 %vm832_vm1, %v774_v53 }
 0x127   : > { %1967 = vmatmul.msk.f32.gmra.mxu2 %vm354_vm0, %v1236_v55  ;;  %v325_v55 = vld [vmem:[%s2137_s15 + $0x158] sm:$0xff] }
 0x128   : > { %v621_v56 = vpop.f32.mrf.mxu0 }
 0x129   : > { %v622_v58 = vadd.f32 %v2198_v28, %v621_v56 }
 0x12a   : > { %v1051_v59 = vpop.f32.mrf.mxu1 }
 0x12b   : > { %v775_v60 = vmax.f32 %v622_v58, 0.0  ;;  %v1052_v61 = vadd.f32 %v2291_v34, %v1051_v59  ;;  %1872 = vmatmul.msk.f32.gmra.mxu0 %vm354_vm0, %v317_v57 }
 0x12d   : > { %v1237_v62 = vmax.f32 %v1052_v61, 0.0  ;;  %1920 = vmatmul.msk.f32.gmra.mxu1 %vm832_vm1, %v775_v60 }
 0x12f   : > { %1968 = vmatmul.msk.f32.gmra.mxu2 %vm354_vm0, %v1237_v62  ;;  %v326_v62 = vld [vmem:[%s2137_s15 + $0x160] sm:$0xff] }
 0x130   : > { %v624_v63 = vpop.f32.mrf.mxu0 }
 0x131   : > { %v625_v1 = vadd.f32 %v2198_v28, %v624_v63 }
 0x132   : > { %v1054_v2 = vpop.f32.mrf.mxu1 }
 0x133   : > { %v776_v3 = vmax.f32 %v625_v1, 0.0  ;;  %v1055_v4 = vadd.f32 %v2291_v34, %v1054_v2  ;;  %1873 = vmatmul.msk.f32.gmra.mxu0 %vm354_vm0, %v318_v0 }
 0x135   : > { %v1238_v5 = vmax.f32 %v1055_v4, 0.0  ;;  %1921 = vmatmul.msk.f32.gmra.mxu1 %vm832_vm1, %v776_v3  ;;  %v331_v3 = vld [vmem:[%s2137_s15 + $0x188] sm:$0xff] }
 0x136   : > { %1886 = vmatmul.msk.f32.vlgmr.msra.gmra.mxu3 %vm354_vm0, %v331_v3 }
 0x137   : > { %1969 = vmatmul.msk.f32.gmra.mxu2 %vm354_vm0, %v1238_v5  ;;  %2043 = vmatpush.msra.mxu3 %v2251_v13 }
 0x138   : > { %v627_v6 = vpop.f32.mrf.mxu0 }
 0x139   : > { %v628_v8 = vadd.f32 %v2198_v28, %v627_v6  ;;  %v327_v6 = vld [vmem:[%s2137_s15 + $0x168] sm:$0xff]  ;;  %2044 = vmatpush.msra.mxu3 %v2259_v17 }
 0x13a   : > { %v1057_v9 = vpop.f32.mrf.mxu1 }
 0x13b   : > { %v777_v10 = vmax.f32 %v628_v8, 0.0  ;;  %v1058_v11 = vadd.f32 %v2291_v34, %v1057_v9  ;;  %1874 = vmatmul.msk.f32.gmra.mxu0 %vm354_vm0, %v319_v7  ;;  %2045 = vmatpush.msra.mxu3 %v2266_v19 }
 0x13d   : > { %v1239_v12 = vmax.f32 %v1058_v11, 0.0  ;;  %1922 = vmatmul.msk.f32.gmra.mxu1 %vm832_vm1, %v777_v10  ;;  %v332_v11 = vld [vmem:[%s2137_s15 + $0x190] sm:$0xff]  ;;  %2046 = vmatpush.msra.mxu3 %v2273_v20  ;;  %v333_v20 = vld [vmem:[%s2137_s15 + $0x198] sm:$0xff] }
 0x13e   : > { %1887 = vmatmul.msk.f32.gmra.mxu3 %vm354_vm0, %v332_v11 }
 0x13f   : > { %1970 = vmatmul.msk.f32.gmra.mxu2 %vm354_vm0, %v1239_v12  ;;  %v328_v12 = vld [vmem:[%s2137_s15 + $0x170] sm:$0xff] }
 0x140   : > { %v630_v14 = vpop.f32.mrf.mxu0 }
 0x141   : > { %v631_v16 = vadd.f32 %v2198_v28, %v630_v14 }
 0x142   : > { %v1060_v18 = vpop.f32.mrf.mxu1 }
 0x143   : > { %v778_v21 = vmax.f32 %v631_v16, 0.0  ;;  %v1061_v22 = vadd.f32 %v2291_v34, %v1060_v18  ;;  %1875 = vmatmul.msk.f32.gmra.mxu0 %vm354_vm0, %v320_v15 }
 0x145   : > { %v1240_v23 = vmax.f32 %v1061_v22, 0.0  ;;  %1923 = vmatmul.msk.f32.gmra.mxu1 %vm832_vm1, %v778_v21  ;;  %v329_v22 = vld [vmem:[%s2137_s15 + $0x178] sm:$0xff] }
 0x146   : > { %1888 = vmatmul.msk.f32.gmra.mxu3 %vm354_vm0, %v333_v20  ;;  %v340_v20 = vld [vmem:[%s2137_s15 + $0x1d0] sm:$0xff] }
 0x147   : > { %1971 = vmatmul.msk.f32.gmra.mxu2 %vm354_vm0, %v1240_v23 }
 0x148   : > { %v633_v24 = vpop.f32.mrf.mxu0 }
 0x149   : > { %v634_v26 = vadd.f32 %v2198_v28, %v633_v24 }
 0x14a   : > { %v1063_v27 = vpop.f32.mrf.mxu1 }
 0x14b   : > { %v779_v29 = vmax.f32 %v634_v26, 0.0  ;;  %v1064_v30 = vadd.f32 %v2291_v34, %v1063_v27  ;;  %1876 = vmatmul.msk.f32.gmra.mxu0 %vm354_vm0, %v321_v25  ;;  %v334_v27 = vld [vmem:[%s2137_s15 + $0x1a0] sm:$0xff] }
 0x14d   : > { %v1241_v31 = vmax.f32 %v1064_v30, 0.0  ;;  %1924 = vmatmul.msk.f32.gmra.mxu1 %vm832_vm1, %v779_v29 }
 0x14e   : > { %1889 = vmatmul.msk.f32.gmra.mxu3 %vm354_vm0, %v334_v27 }
 0x14f   : > { %1972 = vmatmul.msk.f32.gmra.mxu2 %vm354_vm0, %v1241_v31  ;;  %v330_v31 = vld [vmem:[%s2137_s15 + $0x180] sm:$0xff] }
 0x150   : > { %v636_v32 = vpop.f32.mrf.mxu0 }
 0x151   : > { %v637_v35 = vadd.f32 %v2198_v28, %v636_v32 }
 0x152   : > { %v1066_v36 = vpop.f32.mrf.mxu1 }
 0x153   : > { %v780_v37 = vmax.f32 %v637_v35, 0.0  ;;  %v1067_v38 = vadd.f32 %v2291_v34, %v1066_v36  ;;  %1877 = vmatmul.msk.f32.gmra.mxu0 %vm354_vm0, %v322_v33 }
 0x155   : > { %v1242_v39 = vmax.f32 %v1067_v38, 0.0  ;;  %1925 = vmatmul.msk.f32.gmra.mxu1 %vm832_vm1, %v780_v37  ;;  %v335_v37 = vld [vmem:[%s2137_s15 + $0x1a8] sm:$0xff] }
 0x156   : > { %1890 = vmatmul.msk.f32.gmra.mxu3 %vm354_vm0, %v335_v37 }
 0x157   : > { %1973 = vmatmul.msk.f32.gmra.mxu2 %vm354_vm0, %v1242_v39  ;;  %v2412_v39 = vld [vmem:[%s2806_s6] ss:$0 sm:$0xff] }
 0x158   : > { %v639_v40 = vpop.f32.mrf.mxu0 }
 0x159   : > { %v640_v42 = vadd.f32 %v2198_v28, %v639_v40 }
 0x15a   : > { %v1069_v43 = vpop.f32.mrf.mxu1 }
 0x15b   : > { %v781_v44 = vmax.f32 %v640_v42, 0.0  ;;  %v1070_v45 = vadd.f32 %v2291_v34, %v1069_v43  ;;  %1878 = vmatmul.msk.f32.gmra.mxu0 %vm354_vm0, %v323_v41 }
 0x15d   : > { %v1243_v46 = vmax.f32 %v1070_v45, 0.0  ;;  %1926 = vmatmul.msk.f32.gmra.mxu1 %vm832_vm1, %v781_v44 }
 0x15f   : > { %1974 = vmatmul.msk.f32.gmra.mxu2 %vm354_vm0, %v1243_v46 }
 0x160   : > { %v642_v47 = vpop.f32.mrf.mxu0 }
 0x161   : > { %v643_v49 = vadd.f32 %v2198_v28, %v642_v47  ;;  %v336_v47 = vld [vmem:[%s2137_s15 + $0x1b0] sm:$0xff] }
 0x162   : > { %v1072_v50 = vpop.f32.mrf.mxu1  ;;  %1891 = vmatmul.msk.f32.gmra.mxu3 %vm354_vm0, %v336_v47 }
 0x163   : > { %v782_v51 = vmax.f32 %v643_v49, 0.0  ;;  %v1073_v52 = vadd.f32 %v2291_v34, %v1072_v50  ;;  %1879 = vmatmul.msk.f32.gmra.mxu0 %vm354_vm0, %v324_v48 }
 0x165   : > { %v1244_v53 = vmax.f32 %v1073_v52, 0.0  ;;  %1927 = vmatmul.msk.f32.gmra.mxu1 %vm832_vm1, %v782_v51 }
 0x167   : > { %1975 = vmatmul.msk.f32.gmra.mxu2 %vm354_vm0, %v1244_v53 }
 0x168   : > { %v645_v54 = vpop.f32.mrf.mxu0 }
 0x169   : > { %v646_v56 = vadd.f32 %v2198_v28, %v645_v54 }
 0x16a   : > { %v1075_v57 = vpop.f32.mrf.mxu1 }
 0x16b   : > { %v783_v58 = vmax.f32 %v646_v56, 0.0  ;;  %v1076_v59 = vadd.f32 %v2291_v34, %v1075_v57  ;;  %1880 = vmatmul.msk.f32.gmra.mxu0 %vm354_vm0, %v325_v55  ;;  %v337_v56 = vld [vmem:[%s2137_s15 + $0x1b8] sm:$0xff] }
 0x16c   : > { %1892 = vmatmul.msk.f32.gmra.mxu3 %vm354_vm0, %v337_v56 }
 0x16d   : > { %v1245_v60 = vmax.f32 %v1076_v59, 0.0  ;;  %1928 = vmatmul.msk.f32.gmra.mxu1 %vm832_vm1, %v783_v58 }
 0x16f   : > { %1976 = vmatmul.msk.f32.gmra.mxu2 %vm354_vm0, %v1245_v60 }
 0x170   : > { %v648_v61 = vpop.f32.mrf.mxu0 }
 0x171   : > { %v649_v63 = vadd.f32 %v2198_v28, %v648_v61 }
 0x172   : > { %v1078_v0 = vpop.f32.mrf.mxu1 }
 0x173   : > { %v784_v1 = vmax.f32 %v649_v63, 0.0  ;;  %v1079_v2 = vadd.f32 %v2291_v34, %v1078_v0  ;;  %1881 = vmatmul.msk.f32.gmra.mxu0 %vm354_vm0, %v326_v62 }
 0x175   : > { %v1246_v4 = vmax.f32 %v1079_v2, 0.0  ;;  %1929 = vmatmul.msk.f32.gmra.mxu1 %vm832_vm1, %v784_v1  ;;  %v338_v1 = vld [vmem:[%s2137_s15 + $0x1c0] sm:$0xff] }
 0x176   : > { %1893 = vmatmul.msk.f32.gmra.mxu3 %vm354_vm0, %v338_v1 }
 0x177   : > { %1977 = vmatmul.msk.f32.gmra.mxu2 %vm354_vm0, %v1246_v4 }
 0x178   : > { %v651_v5 = vpop.f32.mrf.mxu0 }
 0x179   : > { %v652_v7 = vadd.f32 %v2198_v28, %v651_v5 }
 0x17a   : > { %v1081_v8 = vpop.f32.mrf.mxu1 }
 0x17b   : > { %v785_v9 = vmax.f32 %v652_v7, 0.0  ;;  %v1082_v10 = vadd.f32 %v2291_v34, %v1081_v8  ;;  %1882 = vmatmul.msk.f32.gmra.mxu0 %vm354_vm0, %v327_v6 }
 0x17d   : > { %v1247_v13 = vmax.f32 %v1082_v10, 0.0  ;;  %1930 = vmatmul.msk.f32.gmra.mxu1 %vm832_vm1, %v785_v9  ;;  %v339_v10 = vld [vmem:[%s2137_s15 + $0x1c8] sm:$0xff] }
 0x17e   : > { %1894 = vmatmul.msk.f32.gmra.mxu3 %vm354_vm0, %v339_v10 }
 0x17f   : > { %1978 = vmatmul.msk.f32.gmra.mxu2 %vm354_vm0, %v1247_v13 }
 0x180   : > { %v654_v17 = vpop.f32.mrf.mxu0 }
 0x181   : > { %v655_v19 = vadd.f32 %v2198_v28, %v654_v17 }
 0x182   : > { %v1084_v14 = vpop.f32.mrf.mxu1 }
 0x183   : > { %v786_v15 = vmax.f32 %v655_v19, 0.0  ;;  %v1085_v16 = vadd.f32 %v2291_v34, %v1084_v14  ;;  %1883 = vmatmul.msk.f32.gmra.mxu0 %vm354_vm0, %v328_v12 }
 0x185   : > { %v1248_v18 = vmax.f32 %v1085_v16, 0.0  ;;  %1931 = vmatmul.msk.f32.gmra.mxu1 %vm832_vm1, %v786_v15 }
 0x186   : > { %1895 = vmatmul.msk.f32.gmra.mxu3 %vm354_vm0, %v340_v20 }
 0x187   : > { %1979 = vmatmul.msk.f32.gmra.mxu2 %vm354_vm0, %v1248_v18 }
 0x188   : > { %v657_v21 = vpop.f32.mrf.mxu0 }
 0x189   : > { %v658_v23 = vadd.f32 %v2198_v28, %v657_v21 }
 0x18a   : > { %v1087_v24 = vpop.f32.mrf.mxu1 }
 0x18b   : > { %v787_v25 = vmax.f32 %v658_v23, 0.0  ;;  %v1088_v26 = vadd.f32 %v2291_v34, %v1087_v24  ;;  %1884 = vmatmul.msk.f32.gmra.mxu0 %vm354_vm0, %v329_v22 }
 0x18d   : > { %v1249_v29 = vmax.f32 %v1088_v26, 0.0  ;;  %1932 = vmatmul.msk.f32.gmra.mxu1 %vm832_vm1, %v787_v25 }
 0x18f   : > { %1980 = vmatmul.msk.f32.gmra.mxu2 %vm354_vm0, %v1249_v29  ;;  %v341_v29 = vld [vmem:[%s2137_s15 + $0x1d8] sm:$0xff] }
 0x190   : > { %v660_v30 = vpop.f32.mrf.mxu0  ;;  %1896 = vmatmul.msk.f32.gmra.mxu3 %vm354_vm0, %v341_v29 }
 0x191   : > { %v661_v32 = vadd.f32 %v2198_v28, %v660_v30 }
 0x192   : > { %v1090_v33 = vpop.f32.mrf.mxu1 }
 0x193   : > { %v788_v35 = vmax.f32 %v661_v32, 0.0  ;;  %v1091_v36 = vadd.f32 %v2291_v34, %v1090_v33  ;;  %1885 = vmatmul.msk.f32.gmra.mxu0 %vm354_vm0, %v330_v31 }
 0x195   : > { %v1250_v38 = vmax.f32 %v1091_v36, 0.0  ;;  %1933 = vmatmul.msk.f32.gmra.mxu1 %vm832_vm1, %v788_v35 }
 0x197   : > { %1981 = vmatmul.msk.f32.gmra.mxu2 %vm354_vm0, %v1250_v38 }
 0x198   : > { %v663_v40 = vpop.f32.mrf.mxu0 }
 0x199   : > { %v664_v41 = vadd.f32 %v2198_v28, %v663_v40  ;;  %v342_v40 = vld [vmem:[%s2137_s15 + $0x1e0] sm:$0xff] }
 0x19a   : > { %v1093_v42 = vpop.f32.mrf.mxu1  ;;  %v1515_v43 = vpop.f32.mrf.mxu2  ;;  %1897 = vmatmul.msk.f32.gmra.mxu3 %vm354_vm0, %v342_v40 }
 0x19b   : > { %v789_v44 = vmax.f32 %v664_v41, 0.0  ;;  %v1094_v45 = vadd.f32 %v2291_v34, %v1093_v42  ;;  %v1516_v46 = vadd.f32 %v2412_v39, %v1515_v43 }
 0x19d   : > { %v1251_v48 = vmax.f32 %v1094_v45, 0.0  ;;  %1708 = vst.msk [vmem:[%s2420_s8] sm:$0xff] %vm1707_vm2, %v1516_v46  ;;  %1934 = vmatmul.msk.f32.gmra.mxu1 %vm832_vm1, %v789_v44 }
 0x19f   : > { %1982 = vmatmul.msk.f32.gmra.mxu2 %vm354_vm0, %v1251_v48 }
 0x1a0   : > { %v666_v49 = vpop.f32.mrf.mxu0 }
 0x1a1   : > { %v667_v50 = vadd.f32 %v2198_v28, %v666_v49  ;;  %v343_v49 = vld [vmem:[%s2137_s15 + $0x1e8] sm:$0xff] }
 0x1a2   : > { %v1096_v51 = vpop.f32.mrf.mxu1  ;;  %v1518_v52 = vpop.f32.mrf.mxu2  ;;  %1898 = vmatmul.msk.f32.gmra.mxu3 %vm354_vm0, %v343_v49 }
 0x1a3   : > { %v790_v53 = vmax.f32 %v667_v50, 0.0  ;;  %v1097_v54 = vadd.f32 %v2291_v34, %v1096_v51  ;;  %v1519_v55 = vadd.f32 %v2412_v39, %v1518_v52 }
 0x1a5   : > { %v1252_v57 = vmax.f32 %v1097_v54, 0.0  ;;  %1709 = vst.msk [vmem:[%s2420_s8 + $0x8] sm:$0xff] %vm1707_vm2, %v1519_v55  ;;  %1935 = vmatmul.msk.f32.gmra.mxu1 %vm832_vm1, %v790_v53 }
 0x1a7   : > { %1983 = vmatmul.msk.f32.gmra.mxu2 %vm354_vm0, %v1252_v57 }
 0x1a8   : > { %v669_v58 = vpop.f32.mrf.mxu0 }
 0x1a9   : > { %v670_v59 = vadd.f32 %v2198_v28, %v669_v58  ;;  %v344_v58 = vld [vmem:[%s2137_s15 + $0x1f0] sm:$0xff] }
 0x1aa   : > { %v1099_v60 = vpop.f32.mrf.mxu1  ;;  %v1521_v61 = vpop.f32.mrf.mxu2  ;;  %1899 = vmatmul.msk.f32.gmra.mxu3 %vm354_vm0, %v344_v58 }
 0x1ab   : > { %v791_v62 = vmax.f32 %v670_v59, 0.0  ;;  %v1100_v63 = vadd.f32 %v2291_v34, %v1099_v60  ;;  %v1522_v0 = vadd.f32 %v2412_v39, %v1521_v61 }
 0x1ad   : > { %v1253_v2 = vmax.f32 %v1100_v63, 0.0  ;;  %1710 = vst.msk [vmem:[%s2420_s8 + $0x10] sm:$0xff] %vm1707_vm2, %v1522_v0  ;;  %1936 = vmatmul.msk.f32.gmra.mxu1 %vm832_vm1, %v791_v62 }
 0x1af   : > { %1984 = vmatmul.msk.f32.gmra.mxu2 %vm354_vm0, %v1253_v2 }
 0x1b0   : > { %v672_v3 = vpop.f32.mrf.mxu0 }
 0x1b1   : > { %v673_v4 = vadd.f32 %v2198_v28, %v672_v3  ;;  %v345_v3 = vld [vmem:[%s2137_s15 + $0x1f8] sm:$0xff] }
 0x1b2   : > { %v1102_v5 = vpop.f32.mrf.mxu1  ;;  %v1524_v6 = vpop.f32.mrf.mxu2  ;;  %1900 = vmatmul.msk.f32.gmra.mxu3 %vm354_vm0, %v345_v3 }
 0x1b3   : > { %v792_v7 = vmax.f32 %v673_v4, 0.0  ;;  %v1103_v8 = vadd.f32 %v2291_v34, %v1102_v5  ;;  %v1525_v9 = vadd.f32 %v2412_v39, %v1524_v6 }
 0x1b5   : > { %v1254_v11 = vmax.f32 %v1103_v8, 0.0  ;;  %1711 = vst.msk [vmem:[%s2420_s8 + $0x18] sm:$0xff] %vm1707_vm2, %v1525_v9  ;;  %1937 = vmatmul.msk.f32.gmra.mxu1 %vm832_vm1, %v792_v7 }
 0x1b7   : > { %1985 = vmatmul.msk.f32.gmra.mxu2 %vm354_vm0, %v1254_v11 }
 0x1b8   : > { %v675_v13 = vpop.f32.mrf.mxu0 }
 0x1b9   : > { %v676_v17 = vadd.f32 %v2198_v28, %v675_v13 }
 0x1ba   : > { %v1105_v12 = vpop.f32.mrf.mxu1  ;;  %v1527_v19 = vpop.f32.mrf.mxu2 }
 0x1bb   : > { %v793_v14 = vmax.f32 %v676_v17, 0.0  ;;  %v1106_v15 = vadd.f32 %v2291_v34, %v1105_v12  ;;  %v1528_v16 = vadd.f32 %v2412_v39, %v1527_v19 }
 0x1bd   : > { %v1255_v18 = vmax.f32 %v1106_v15, 0.0  ;;  %1712 = vst.msk [vmem:[%s2420_s8 + $0x20] sm:$0xff] %vm1707_vm2, %v1528_v16  ;;  %1938 = vmatmul.msk.f32.gmra.mxu1 %vm832_vm1, %v793_v14 }
 0x1bf   : > { %1986 = vmatmul.msk.f32.gmra.mxu2 %vm354_vm0, %v1255_v18 }
 0x1c0   : > { %v678_v21 = vpop.f32.mrf.mxu0 }
 0x1c1   : > { %v679_v22 = vadd.f32 %v2198_v28, %v678_v21 }
 0x1c2   : > { %v1108_v23 = vpop.f32.mrf.mxu1  ;;  %v1530_v24 = vpop.f32.mrf.mxu2 }
 0x1c3   : > { %v794_v25 = vmax.f32 %v679_v22, 0.0  ;;  %v1109_v26 = vadd.f32 %v2291_v34, %v1108_v23  ;;  %v1531_v27 = vadd.f32 %v2412_v39, %v1530_v24  ;;  %v711_v22 = vpop.f32.mrf.mxu3 }
 0x1c5   : > { %v1256_v30 = vmax.f32 %v1109_v26, 0.0  ;;  %1713 = vst.msk [vmem:[%s2420_s8 + $0x28] sm:$0xff] %vm1707_vm2, %v1531_v27  ;;  %1939 = vmatmul.msk.f32.gmra.mxu1 %vm832_vm1, %v794_v25 }
 0x1c7   : > { %1987 = vmatmul.msk.f32.gmra.mxu2 %vm354_vm0, %v1256_v30 }
 0x1c8   : > { %v681_v31 = vpop.f32.mrf.mxu0 }
 0x1c9   : > { %v682_v32 = vadd.f32 %v2198_v28, %v681_v31 }
 0x1ca   : > { %v1111_v33 = vpop.f32.mrf.mxu1  ;;  %v1533_v35 = vpop.f32.mrf.mxu2 }
 0x1cb   : > { %v795_v36 = vmax.f32 %v682_v32, 0.0  ;;  %v1112_v37 = vadd.f32 %v2291_v34, %v1111_v33  ;;  %v1534_v38 = vadd.f32 %v2412_v39, %v1533_v35  ;;  %v714_v32 = vpop.f32.mrf.mxu3 }
 0x1cc   : > { %v715_v3 = vadd.f32 %v2198_v28, %v714_v32 }
 0x1cd   : > { %v1257_v41 = vmax.f32 %v1112_v37, 0.0  ;;  %1714 = vst.msk [vmem:[%s2420_s8 + $0x30] sm:$0xff] %vm1707_vm2, %v1534_v38  ;;  %1940 = vmatmul.msk.f32.gmra.mxu1 %vm832_vm1, %v795_v36 }
 0x1cf   : > { %1988 = vmatmul.msk.f32.gmra.mxu2 %vm354_vm0, %v1257_v41 }
 0x1d0   : > { %v684_v42 = vpop.f32.mrf.mxu0 }
 0x1d1   : > { %v685_v43 = vadd.f32 %v2198_v28, %v684_v42 }
 0x1d2   : > { %v1114_v44 = vpop.f32.mrf.mxu1  ;;  %v1536_v45 = vpop.f32.mrf.mxu2 }
 0x1d3   : > { %v796_v46 = vmax.f32 %v685_v43, 0.0  ;;  %v1115_v47 = vadd.f32 %v2291_v34, %v1114_v44  ;;  %v1537_v48 = vadd.f32 %v2412_v39, %v1536_v45  ;;  %v717_v44 = vpop.f32.mrf.mxu3 }
 0x1d5   : > { %v1258_v50 = vmax.f32 %v1115_v47, 0.0  ;;  %1715 = vst.msk [vmem:[%s2420_s8 + $0x38] sm:$0xff] %vm1707_vm2, %v1537_v48  ;;  %1941 = vmatmul.msk.f32.gmra.mxu1 %vm832_vm1, %v796_v46 }
 0x1d7   : > { %1989 = vmatmul.msk.f32.gmra.mxu2 %vm354_vm0, %v1258_v50 }
 0x1d8   : > { %v687_v51 = vpop.f32.mrf.mxu0 }
 0x1d9   : > { %v688_v52 = vadd.f32 %v2198_v28, %v687_v51 }
 0x1da   : > { %v1117_v53 = vpop.f32.mrf.mxu1  ;;  %v1539_v54 = vpop.f32.mrf.mxu2 }
 0x1db   : > { %v797_v55 = vmax.f32 %v688_v52, 0.0  ;;  %v1118_v56 = vadd.f32 %v2291_v34, %v1117_v53  ;;  %v1540_v57 = vadd.f32 %v2412_v39, %v1539_v54  ;;  %v720_v58 = vpop.f32.mrf.mxu3 }
 0x1dd   : > { %v1259_v59 = vmax.f32 %v1118_v56, 0.0  ;;  %1716 = vst.msk [vmem:[%s2420_s8 + $0x40] sm:$0xff] %vm1707_vm2, %v1540_v57  ;;  %1942 = vmatmul.msk.f32.gmra.mxu1 %vm832_vm1, %v797_v55 }
 0x1df   : > { %1990 = vmatmul.msk.f32.gmra.mxu2 %vm354_vm0, %v1259_v59 }
 0x1e0   : > { %v690_v60 = vpop.f32.mrf.mxu0 }
 0x1e1   : > { %v691_v61 = vadd.f32 %v2198_v28, %v690_v60  ;;  %v712_v60 = vadd.f32 %v2198_v28, %v711_v22 }
 0x1e2   : > { %v1120_v62 = vpop.f32.mrf.mxu1  ;;  %v1542_v63 = vpop.f32.mrf.mxu2 }
 0x1e3   : > { %v798_v0 = vmax.f32 %v691_v61, 0.0  ;;  %v1121_v1 = vadd.f32 %v2291_v34, %v1120_v62  ;;  %v1543_v2 = vadd.f32 %v2412_v39, %v1542_v63  ;;  %v805_v61 = vmax.f32 %v712_v60, 0.0 }
 0x1e5   : > { %v1260_v4 = vmax.f32 %v1121_v1, 0.0  ;;  %1717 = vst.msk [vmem:[%s2420_s8 + $0x48] sm:$0xff] %vm1707_vm2, %v1543_v2  ;;  %1943 = vmatmul.msk.f32.gmra.mxu1 %vm832_vm1, %v798_v0 }
 0x1e7   : > { %1991 = vmatmul.msk.f32.gmra.mxu2 %vm354_vm0, %v1260_v4  ;;  %v723_v4 = vpop.f32.mrf.mxu3 }
 0x1e8   : > { %v693_v5 = vpop.f32.mrf.mxu0 }
 0x1e9   : > { %v694_v6 = vadd.f32 %v2198_v28, %v693_v5  ;;  %v806_v5 = vmax.f32 %v715_v3, 0.0 }
 0x1ea   : > { %v1123_v7 = vpop.f32.mrf.mxu1  ;;  %v1545_v8 = vpop.f32.mrf.mxu2 }
 0x1eb   : > { %v799_v9 = vmax.f32 %v694_v6, 0.0  ;;  %v1124_v10 = vadd.f32 %v2291_v34, %v1123_v7  ;;  %v1546_v11 = vadd.f32 %v2412_v39, %v1545_v8 }
 0x1ed   : > { %v1261_v13 = vmax.f32 %v1124_v10, 0.0  ;;  %1718 = vst.msk [vmem:[%s2420_s8 + $0x50] sm:$0xff] %vm1707_vm2, %v1546_v11  ;;  %1944 = vmatmul.msk.f32.gmra.mxu1 %vm832_vm1, %v799_v9 }
 0x1ef   : > { %1992 = vmatmul.msk.f32.gmra.mxu2 %vm354_vm0, %v1261_v13  ;;  %v726_v13 = vpop.f32.mrf.mxu3 }
 0x1f0   : > { %v696_v17 = vpop.f32.mrf.mxu0 }
 0x1f1   : > { %v697_v12 = vadd.f32 %v2198_v28, %v696_v17 }
 0x1f2   : > { %v1126_v19 = vpop.f32.mrf.mxu1  ;;  %v1548_v14 = vpop.f32.mrf.mxu2 }
 0x1f3   : > { %v800_v15 = vmax.f32 %v697_v12, 0.0  ;;  %v1127_v16 = vadd.f32 %v2291_v34, %v1126_v19  ;;  %v1549_v20 = vadd.f32 %v2412_v39, %v1548_v14 }
 0x1f5   : > { %v1262_v18 = vmax.f32 %v1127_v16, 0.0  ;;  %1719 = vst.msk [vmem:[%s2420_s8 + $0x58] sm:$0xff] %vm1707_vm2, %v1549_v20  ;;  %1945 = vmatmul.msk.f32.gmra.mxu1 %vm832_vm1, %v800_v15 }
 0x1f7   : > { %1993 = vmatmul.msk.f32.gmra.mxu2 %vm354_vm0, %v1262_v18 }
 0x1f8   : > { %v699_v21 = vpop.f32.mrf.mxu0 }
 0x1f9   : > { %v700_v23 = vadd.f32 %v2198_v28, %v699_v21  ;;  %v729_v21 = vpop.f32.mrf.mxu3 }
 0x1fa   : > { %v1129_v24 = vpop.f32.mrf.mxu1  ;;  %v1551_v25 = vpop.f32.mrf.mxu2 }
 0x1fb   : > { %v801_v26 = vmax.f32 %v700_v23, 0.0  ;;  %v1130_v27 = vadd.f32 %v2291_v34, %v1129_v24  ;;  %v1552_v29 = vadd.f32 %v2412_v39, %v1551_v25 }
 0x1fd   : > { %v1263_v30 = vmax.f32 %v1130_v27, 0.0  ;;  %1720 = vst.msk [vmem:[%s2420_s8 + $0x60] sm:$0xff] %vm1707_vm2, %v1552_v29  ;;  %1946 = vmatmul.msk.f32.gmra.mxu1 %vm832_vm1, %v801_v26 }
 0x1ff   : > { %1994 = vmatmul.msk.f32.gmra.mxu2 %vm354_vm0, %v1263_v30 }
 0x200   : > { %v702_v31 = vpop.f32.mrf.mxu0 }
 0x201   : > { %v703_v33 = vadd.f32 %v2198_v28, %v702_v31 }
 0x202   : > { %v1132_v35 = vpop.f32.mrf.mxu1  ;;  %v1554_v36 = vpop.f32.mrf.mxu2 }
 0x203   : > { %v802_v37 = vmax.f32 %v703_v33, 0.0  ;;  %v1133_v38 = vadd.f32 %v2291_v34, %v1132_v35  ;;  %v1555_v40 = vadd.f32 %v2412_v39, %v1554_v36  ;;  %v732_v35 = vpop.f32.mrf.mxu3 }
 0x205   : > { %v1264_v41 = vmax.f32 %v1133_v38, 0.0  ;;  %1721 = vst.msk [vmem:[%s2420_s8 + $0x68] sm:$0xff] %vm1707_vm2, %v1555_v40  ;;  %1947 = vmatmul.msk.f32.gmra.mxu1 %vm832_vm1, %v802_v37 }
 0x207   : > { %1995 = vmatmul.msk.f32.gmra.mxu2 %vm354_vm0, %v1264_v41 }
 0x208   : > { %v705_v42 = vpop.f32.mrf.mxu0 }
 0x209   : > { %v706_v43 = vadd.f32 %v2198_v28, %v705_v42 }
 0x20a   : > { %v1135_v45 = vpop.f32.mrf.mxu1  ;;  %v1557_v46 = vpop.f32.mrf.mxu2 }
 0x20b   : > { %v803_v47 = vmax.f32 %v706_v43, 0.0  ;;  %v1136_v48 = vadd.f32 %v2291_v34, %v1135_v45  ;;  %v1558_v49 = vadd.f32 %v2412_v39, %v1557_v46  ;;  %v735_v46 = vpop.f32.mrf.mxu3 }
 0x20d   : > { %v1265_v50 = vmax.f32 %v1136_v48, 0.0  ;;  %1722 = vst.msk [vmem:[%s2420_s8 + $0x70] sm:$0xff] %vm1707_vm2, %v1558_v49  ;;  %1948 = vmatmul.msk.f32.gmra.mxu1 %vm832_vm1, %v803_v47 }
 0x20f   : > { %1996 = vmatmul.msk.f32.gmra.mxu2 %vm354_vm0, %v1265_v50 }
 0x210   : > { %v708_v51 = vpop.f32.mrf.mxu0 }
 0x211   : > { %v709_v52 = vadd.f32 %v2198_v28, %v708_v51  ;;  %v2569_v28 = vld [vmem:[%s2802_s2] ss:$0 sm:$0xff] }
 0x212   : > { %v1138_v53 = vpop.f32.mrf.mxu1  ;;  %v1560_v54 = vpop.f32.mrf.mxu2  ;;  %v718_v11 = vadd.f32 %v2569_v28, %v717_v44  ;;  %v721_v20 = vadd.f32 %v2569_v28, %v720_v58  ;;  %v724_v27 = vadd.f32 %v2569_v28, %v723_v4  ;;  %v727_v37 = vadd.f32 %v2569_v28, %v726_v13 }
 0x213   : > { %v804_v55 = vmax.f32 %v709_v52, 0.0  ;;  %v1139_v56 = vadd.f32 %v2291_v34, %v1138_v53  ;;  %v1561_v57 = vadd.f32 %v2412_v39, %v1560_v54  ;;  %v730_v45 = vadd.f32 %v2569_v28, %v729_v21  ;;  %v738_v54 = vpop.f32.mrf.mxu3 }
 0x214   : > { %v807_v17 = vmax.f32 %v718_v11, 0.0  ;;  %v808_v18 = vmax.f32 %v721_v20, 0.0  ;;  %v809_v29 = vmax.f32 %v724_v27, 0.0  ;;  %v810_v38 = vmax.f32 %v727_v37, 0.0 }
 0x215   : > { %v1266_v59 = vmax.f32 %v1139_v56, 0.0  ;;  %1723 = vst.msk [vmem:[%s2420_s8 + $0x78] sm:$0xff] %vm1707_vm2, %v1561_v57  ;;  %1949 = vmatmul.msk.f32.vlgmr.msrb.gmra.mxu3 %vm832_vm1, %v804_v55  ;;  %v811_v47 = vmax.f32 %v730_v45, 0.0  ;;  %v733_v53 = vadd.f32 %v2569_v28, %v732_v35 }
 0x217   : > { %1997 = vmatmul.msk.f32.gmra.mxu2 %vm354_vm0, %v1266_v59  ;;  %v812_v55 = vmax.f32 %v733_v53, 0.0 }
 0x21a   : > { %v1141_v62 = vpop.f32.mrf.mxu1  ;;  %v1563_v63 = vpop.f32.mrf.mxu2 }
 0x21b   : > { %v1142_v0 = vadd.f32 %v2291_v34, %v1141_v62  ;;  %v1564_v1 = vadd.f32 %v2412_v39, %v1563_v63  ;;  %v741_v63 = vpop.f32.mrf.mxu3 }
 0x21d   : > { %v1267_v2 = vmax.f32 %v1142_v0, 0.0  ;;  %1724 = vst.msk [vmem:[%s2420_s8 + $0x80] sm:$0xff] %vm1707_vm2, %v1564_v1  ;;  %1950 = vmatmul.msk.f32.gmra.mxu3 %vm832_vm1, %v805_v61  ;;  %v736_v61 = vadd.f32 %v2569_v28, %v735_v46 }
 0x21f   : > { %1998 = vmatmul.msk.f32.gmra.mxu2 %vm354_vm0, %v1267_v2  ;;  %v813_v62 = vmax.f32 %v736_v61, 0.0 }
 0x222   : > { %v1144_v6 = vpop.f32.mrf.mxu1  ;;  %v1566_v7 = vpop.f32.mrf.mxu2 }
 0x223   : > { %v1145_v8 = vadd.f32 %v2291_v34, %v1144_v6  ;;  %v1567_v9 = vadd.f32 %v2412_v39, %v1566_v7  ;;  %v744_v11 = vpop.f32.mrf.mxu3 }
 0x225   : > { %v1268_v10 = vmax.f32 %v1145_v8, 0.0  ;;  %1725 = vst.msk [vmem:[%s2420_s8 + $0x88] sm:$0xff] %vm1707_vm2, %v1567_v9  ;;  %1951 = vmatmul.msk.f32.gmra.mxu3 %vm832_vm1, %v806_v5  ;;  %v739_v5 = vadd.f32 %v2569_v28, %v738_v54 }
 0x227   : > { %1999 = vmatmul.msk.f32.gmra.mxu2 %vm354_vm0, %v1268_v10  ;;  %v814_v6 = vmax.f32 %v739_v5, 0.0 }
 0x22a   : > { %v1147_v12 = vpop.f32.mrf.mxu1  ;;  %v1569_v19 = vpop.f32.mrf.mxu2 }
 0x22b   : > { %v1148_v14 = vadd.f32 %v2291_v34, %v1147_v12  ;;  %v1570_v15 = vadd.f32 %v2412_v39, %v1569_v19  ;;  %v747_v21 = vpop.f32.mrf.mxu3 }
 0x22d   : > { %v1269_v16 = vmax.f32 %v1148_v14, 0.0  ;;  %1726 = vst.msk [vmem:[%s2420_s8 + $0x90] sm:$0xff] %vm1707_vm2, %v1570_v15  ;;  %1952 = vmatmul.msk.f32.gmra.mxu3 %vm832_vm1, %v807_v17  ;;  %v742_v17 = vadd.f32 %v2569_v28, %v741_v63 }
 0x22f   : > { %2000 = vmatmul.msk.f32.gmra.mxu2 %vm354_vm0, %v1269_v16  ;;  %v815_v12 = vmax.f32 %v742_v17, 0.0 }
 0x232   : > { %v1150_v22 = vpop.f32.mrf.mxu1  ;;  %v1572_v23 = vpop.f32.mrf.mxu2 }
 0x233   : > { %v1151_v24 = vadd.f32 %v2291_v34, %v1150_v22  ;;  %v1573_v25 = vadd.f32 %v2412_v39, %v1572_v23 }
 0x235   : > { %v1270_v26 = vmax.f32 %v1151_v24, 0.0  ;;  %1727 = vst.msk [vmem:[%s2420_s8 + $0x98] sm:$0xff] %vm1707_vm2, %v1573_v25  ;;  %1953 = vmatmul.msk.f32.gmra.mxu3 %vm832_vm1, %v808_v18  ;;  %v745_v18 = vadd.f32 %v2569_v28, %v744_v11 }
 0x237   : > { %2001 = vmatmul.msk.f32.gmra.mxu2 %vm354_vm0, %v1270_v26  ;;  %v816_v22 = vmax.f32 %v745_v18, 0.0 }
 0x23a   : > { %v1153_v30 = vpop.f32.mrf.mxu1  ;;  %v1575_v31 = vpop.f32.mrf.mxu2 }
 0x23b   : > { %v1154_v32 = vadd.f32 %v2291_v34, %v1153_v30  ;;  %v1576_v33 = vadd.f32 %v2412_v39, %v1575_v31  ;;  %v750_v30 = vpop.f32.mrf.mxu3 }
 0x23d   : > { %v1271_v36 = vmax.f32 %v1154_v32, 0.0  ;;  %1728 = vst.msk [vmem:[%s2420_s8 + $0xa0] sm:$0xff] %vm1707_vm2, %v1576_v33  ;;  %1954 = vmatmul.msk.f32.gmra.mxu3 %vm832_vm1, %v809_v29  ;;  %v748_v29 = vadd.f32 %v2569_v28, %v747_v21 }
 0x23f   : > { %2002 = vmatmul.msk.f32.gmra.mxu2 %vm354_vm0, %v1271_v36  ;;  %v817_v31 = vmax.f32 %v748_v29, 0.0 }
 0x242   : > { %v1156_v40 = vpop.f32.mrf.mxu1  ;;  %v1578_v41 = vpop.f32.mrf.mxu2 }
 0x243   : > { %v1157_v42 = vadd.f32 %v2291_v34, %v1156_v40  ;;  %v1579_v43 = vadd.f32 %v2412_v39, %v1578_v41  ;;  %v753_v41 = vpop.f32.mrf.mxu3 }
 0x245   : > { %v1272_v44 = vmax.f32 %v1157_v42, 0.0  ;;  %1729 = vst.msk [vmem:[%s2420_s8 + $0xa8] sm:$0xff] %vm1707_vm2, %v1579_v43  ;;  %1955 = vmatmul.msk.f32.gmra.mxu3 %vm832_vm1, %v810_v38  ;;  %v751_v38 = vadd.f32 %v2569_v28, %v750_v30 }
 0x247   : > { %2003 = vmatmul.msk.f32.gmra.mxu2 %vm354_vm0, %v1272_v44  ;;  %v818_v40 = vmax.f32 %v751_v38, 0.0 }
 0x24a   : > { %v1159_v48 = vpop.f32.mrf.mxu1  ;;  %v1581_v49 = vpop.f32.mrf.mxu2 }
 0x24b   : > { %v1160_v50 = vadd.f32 %v2291_v34, %v1159_v48  ;;  %v1582_v51 = vadd.f32 %v2412_v39, %v1581_v49 }
 0x24d   : > { %v1273_v52 = vmax.f32 %v1160_v50, 0.0  ;;  %1730 = vst.msk [vmem:[%s2420_s8 + $0xb0] sm:$0xff] %vm1707_vm2, %v1582_v51  ;;  %1956 = vmatmul.msk.f32.gmra.mxu3 %vm832_vm1, %v811_v47  ;;  %v754_v47 = vadd.f32 %v2569_v28, %v753_v41 }
 0x24f   : > { %2004 = vmatmul.msk.f32.gmra.mxu2 %vm354_vm0, %v1273_v52  ;;  %v819_v48 = vmax.f32 %v754_v47, 0.0 }
 0x252   : > { %v1162_v56 = vpop.f32.mrf.mxu1  ;;  %v1584_v57 = vpop.f32.mrf.mxu2 }
 0x253   : > { %v1163_v58 = vadd.f32 %v2291_v34, %v1162_v56  ;;  %v1585_v59 = vadd.f32 %v2412_v39, %v1584_v57 }
 0x255   : > { %v1274_v60 = vmax.f32 %v1163_v58, 0.0  ;;  %1731 = vst.msk [vmem:[%s2420_s8 + $0xb8] sm:$0xff] %vm1707_vm2, %v1585_v59  ;;  %1957 = vmatmul.msk.f32.gmra.mxu3 %vm832_vm1, %v812_v55 }
 0x257   : > { %2005 = vmatmul.msk.f32.gmra.mxu2 %vm354_vm0, %v1274_v60 }
 0x25a   : > { %v1165_v0 = vpop.f32.mrf.mxu1  ;;  %v1587_v1 = vpop.f32.mrf.mxu2 }
 0x25b   : > { %v1166_v2 = vadd.f32 %v2291_v34, %v1165_v0  ;;  %v1588_v3 = vadd.f32 %v2412_v39, %v1587_v1 }
 0x25d   : > { %v1275_v4 = vmax.f32 %v1166_v2, 0.0  ;;  %1732 = vst.msk [vmem:[%s2420_s8 + $0xc0] sm:$0xff] %vm1707_vm2, %v1588_v3  ;;  %1958 = vmatmul.msk.f32.gmra.mxu3 %vm832_vm1, %v813_v62 }
 0x25f   : > { %2006 = vmatmul.msk.f32.gmra.mxu2 %vm354_vm0, %v1275_v4 }
 0x262   : > { %v1168_v7 = vpop.f32.mrf.mxu1  ;;  %v1590_v8 = vpop.f32.mrf.mxu2 }
 0x263   : > { %v1169_v9 = vadd.f32 %v2291_v34, %v1168_v7  ;;  %v1591_v10 = vadd.f32 %v2412_v39, %v1590_v8 }
 0x265   : > { %v1276_v13 = vmax.f32 %v1169_v9, 0.0  ;;  %1733 = vst.msk [vmem:[%s2420_s8 + $0xc8] sm:$0xff] %vm1707_vm2, %v1591_v10  ;;  %1959 = vmatmul.msk.f32.gmra.mxu3 %vm832_vm1, %v814_v6 }
 0x267   : > { %2007 = vmatmul.msk.f32.gmra.mxu2 %vm354_vm0, %v1276_v13 }
 0x26a   : > { %v1171_v19 = vpop.f32.mrf.mxu1  ;;  %v1593_v14 = vpop.f32.mrf.mxu2 }
 0x26b   : > { %v1172_v15 = vadd.f32 %v2291_v34, %v1171_v19  ;;  %v1594_v16 = vadd.f32 %v2412_v39, %v1593_v14 }
 0x26d   : > { %v1277_v20 = vmax.f32 %v1172_v15, 0.0  ;;  %1734 = vst.msk [vmem:[%s2420_s8 + $0xd0] sm:$0xff] %vm1707_vm2, %v1594_v16  ;;  %1960 = vmatmul.msk.f32.gmra.mxu3 %vm832_vm1, %v815_v12 }
 0x26f   : > { %2008 = vmatmul.msk.f32.gmra.mxu2 %vm354_vm0, %v1277_v20 }
 0x272   : > { %v1174_v23 = vpop.f32.mrf.mxu1  ;;  %v1596_v24 = vpop.f32.mrf.mxu2 }
 0x273   : > { %v1175_v25 = vadd.f32 %v2291_v34, %v1174_v23  ;;  %v1597_v26 = vadd.f32 %v2412_v39, %v1596_v24  ;;  %v2646_v34 = vld [vmem:[%s2804_s4] ss:$0 sm:$0xff] }
 0x275   : > { %v1278_v27 = vmax.f32 %v1175_v25, 0.0  ;;  %1735 = vst.msk [vmem:[%s2420_s8 + $0xd8] sm:$0xff] %vm1707_vm2, %v1597_v26  ;;  %1961 = vmatmul.msk.f32.gmra.mxu3 %vm832_vm1, %v816_v22 }
 0x277   : > { %2009 = vmatmul.msk.f32.gmra.mxu2 %vm354_vm0, %v1278_v27 }
 0x27a   : > { %v1177_v32 = vpop.f32.mrf.mxu1  ;;  %v1599_v33 = vpop.f32.mrf.mxu2 }
 0x27b   : > { %v1178_v35 = vadd.f32 %v2646_v34, %v1177_v32  ;;  %v1600_v36 = vadd.f32 %v2412_v39, %v1599_v33 }
 0x27d   : > { %v1279_v37 = vmax.f32 %v1178_v35, 0.0  ;;  %1736 = vst.msk [vmem:[%s2420_s8 + $0xe0] sm:$0xff] %vm1707_vm2, %v1600_v36  ;;  %1962 = vmatmul.msk.f32.gmra.mxu3 %vm832_vm1, %v817_v31 }
 0x27f   : > { %2010 = vmatmul.msk.f32.gmra.mxu2 %vm354_vm0, %v1279_v37 }
 0x282   : > { %v1180_v42 = vpop.f32.mrf.mxu1  ;;  %v1602_v43 = vpop.f32.mrf.mxu2 }
 0x283   : > { %v1181_v44 = vadd.f32 %v2646_v34, %v1180_v42  ;;  %v1603_v45 = vadd.f32 %v2412_v39, %v1602_v43 }
 0x285   : > { %v1280_v46 = vmax.f32 %v1181_v44, 0.0  ;;  %1737 = vst.msk [vmem:[%s2420_s8 + $0xe8] sm:$0xff] %vm1707_vm2, %v1603_v45  ;;  %1963 = vmatmul.msk.f32.gmra.mxu3 %vm832_vm1, %v818_v40 }
 0x287   : > { %2011 = vmatmul.msk.f32.gmra.mxu2 %vm354_vm0, %v1280_v46 }
 0x28a   : > { %v1183_v49 = vpop.f32.mrf.mxu1  ;;  %v1605_v50 = vpop.f32.mrf.mxu2 }
 0x28b   : > { %v1184_v51 = vadd.f32 %v2646_v34, %v1183_v49  ;;  %v1606_v52 = vadd.f32 %v2412_v39, %v1605_v50 }
 0x28d   : > { %v1281_v53 = vmax.f32 %v1184_v51, 0.0  ;;  %1738 = vst.msk [vmem:[%s2420_s8 + $0xf0] sm:$0xff] %vm1707_vm2, %v1606_v52  ;;  %1964 = vmatmul.msk.f32.gmra.mxu3 %vm832_vm1, %v819_v48 }
 0x28f   : > { %2012 = vmatmul.msk.f32.gmra.mxu2 %vm354_vm0, %v1281_v53 }
 0x292   : > { %v1608_v54 = vpop.f32.mrf.mxu2 }
 0x293   : > { %v1609_v28 = vadd.f32 %v2412_v39, %v1608_v54 }
 0x295   : > { %1739 = vst.msk [vmem:[%s2420_s8 + $0xf8] sm:$0xff] %vm1707_vm2, %v1609_v28 }
 0x298   : > { %v1186_v55 = vpop.f32.mrf.mxu3 }
 0x299   : > { %v1187_v56 = vadd.f32 %v2646_v34, %v1186_v55 }
 0x29a   : > { %v1611_v57 = vpop.f32.mrf.mxu2 }
 0x29b   : > { %v1282_v58 = vmax.f32 %v1187_v56, 0.0  ;;  %v1612_v59 = vadd.f32 %v2412_v39, %v1611_v57 }
 0x29d   : > { %1740 = vst.msk [vmem:[%s2420_s8 + $0x100] sm:$0xff] %vm1707_vm2, %v1612_v59  ;;  %2013 = vmatmul.msk.f32.gmra.mxu2 %vm354_vm0, %v1282_v58 }
 0x2a0   : > { %v1189_v60 = vpop.f32.mrf.mxu3 }
 0x2a1   : > { %v1190_v61 = vadd.f32 %v2646_v34, %v1189_v60 }
 0x2a2   : > { %v1614_v62 = vpop.f32.mrf.mxu2 }
 0x2a3   : > { %v1283_v63 = vmax.f32 %v1190_v61, 0.0  ;;  %v1615_v0 = vadd.f32 %v2412_v39, %v1614_v62 }
 0x2a5   : > { %1741 = vst.msk [vmem:[%s2420_s8 + $0x108] sm:$0xff] %vm1707_vm2, %v1615_v0  ;;  %2014 = vmatmul.msk.f32.vlgmr.msra.gmra.mxu3 %vm354_vm0, %v1283_v63 }
 0x2a8   : > { %v1192_v1 = vpop.f32.mrf.mxu3 }
 0x2a9   : > { %v1193_v2 = vadd.f32 %v2646_v34, %v1192_v1 }
 0x2aa   : > { %v1617_v3 = vpop.f32.mrf.mxu2 }
 0x2ab   : > { %v1284_v4 = vmax.f32 %v1193_v2, 0.0  ;;  %v1618_v5 = vadd.f32 %v2412_v39, %v1617_v3 }
 0x2ad   : > { %1742 = vst.msk [vmem:[%s2420_s8 + $0x110] sm:$0xff] %vm1707_vm2, %v1618_v5  ;;  %2015 = vmatmul.msk.f32.gmra.mxu3 %vm354_vm0, %v1284_v4 }
 0x2b0   : > { %v1195_v6 = vpop.f32.mrf.mxu3 }
 0x2b1   : > { %v1196_v7 = vadd.f32 %v2646_v34, %v1195_v6 }
 0x2b2   : > { %v1620_v8 = vpop.f32.mrf.mxu2 }
 0x2b3   : > { %v1285_v9 = vmax.f32 %v1196_v7, 0.0  ;;  %v1621_v10 = vadd.f32 %v2412_v39, %v1620_v8 }
 0x2b5   : > { %1743 = vst.msk [vmem:[%s2420_s8 + $0x118] sm:$0xff] %vm1707_vm2, %v1621_v10  ;;  %2016 = vmatmul.msk.f32.gmra.mxu3 %vm354_vm0, %v1285_v9 }
 0x2b8   : > { %v1198_v11 = vpop.f32.mrf.mxu3 }
 0x2b9   : > { %v1199_v13 = vadd.f32 %v2646_v34, %v1198_v11 }
 0x2ba   : > { %v1623_v17 = vpop.f32.mrf.mxu2 }
 0x2bb   : > { %v1286_v12 = vmax.f32 %v1199_v13, 0.0  ;;  %v1624_v19 = vadd.f32 %v2412_v39, %v1623_v17 }
 0x2bd   : > { %1744 = vst.msk [vmem:[%s2420_s8 + $0x120] sm:$0xff] %vm1707_vm2, %v1624_v19  ;;  %2017 = vmatmul.msk.f32.gmra.mxu3 %vm354_vm0, %v1286_v12 }
 0x2c0   : > { %v1201_v14 = vpop.f32.mrf.mxu3 }
 0x2c1   : > { %v1202_v15 = vadd.f32 %v2646_v34, %v1201_v14 }
 0x2c2   : > { %v1626_v16 = vpop.f32.mrf.mxu2 }
 0x2c3   : > { %v1287_v20 = vmax.f32 %v1202_v15, 0.0  ;;  %v1627_v18 = vadd.f32 %v2412_v39, %v1626_v16 }
 0x2c5   : > { %1745 = vst.msk [vmem:[%s2420_s8 + $0x128] sm:$0xff] %vm1707_vm2, %v1627_v18  ;;  %2018 = vmatmul.msk.f32.gmra.mxu3 %vm354_vm0, %v1287_v20 }
 0x2c8   : > { %v1204_v21 = vpop.f32.mrf.mxu3 }
 0x2c9   : > { %v1205_v22 = vadd.f32 %v2646_v34, %v1204_v21 }
 0x2ca   : > { %v1629_v23 = vpop.f32.mrf.mxu2 }
 0x2cb   : > { %v1288_v24 = vmax.f32 %v1205_v22, 0.0  ;;  %v1630_v25 = vadd.f32 %v2412_v39, %v1629_v23 }
 0x2cd   : > { %1746 = vst.msk [vmem:[%s2420_s8 + $0x130] sm:$0xff] %vm1707_vm2, %v1630_v25  ;;  %2019 = vmatmul.msk.f32.gmra.mxu3 %vm354_vm0, %v1288_v24 }
 0x2d0   : > { %v1207_v26 = vpop.f32.mrf.mxu3 }
 0x2d1   : > { %v1208_v27 = vadd.f32 %v2646_v34, %v1207_v26 }
 0x2d2   : > { %v1632_v29 = vpop.f32.mrf.mxu2 }
 0x2d3   : > { %v1289_v30 = vmax.f32 %v1208_v27, 0.0  ;;  %v1633_v31 = vadd.f32 %v2412_v39, %v1632_v29 }
 0x2d5   : > { %1747 = vst.msk [vmem:[%s2420_s8 + $0x138] sm:$0xff] %vm1707_vm2, %v1633_v31  ;;  %2020 = vmatmul.msk.f32.gmra.mxu3 %vm354_vm0, %v1289_v30 }
 0x2d8   : > { %v1210_v32 = vpop.f32.mrf.mxu3 }
 0x2d9   : > { %v1211_v33 = vadd.f32 %v2646_v34, %v1210_v32  ;;  %v2060_v32 = vld [vmem:[%s2806_s6] ss:$0 sm:$0xff] }
 0x2da   : > { %v1635_v35 = vpop.f32.mrf.mxu2 }
 0x2db   : > { %v1290_v36 = vmax.f32 %v1211_v33, 0.0  ;;  %v1636_v37 = vadd.f32 %v2412_v39, %v1635_v35 }
 0x2dd   : > { %1748 = vst.msk [vmem:[%s2420_s8 + $0x140] sm:$0xff] %vm1707_vm2, %v1636_v37  ;;  %2021 = vmatmul.msk.f32.gmra.mxu3 %vm354_vm0, %v1290_v36 }
 0x2e0   : > { %v1213_v38 = vpop.f32.mrf.mxu3 }
 0x2e1   : > { %v1214_v40 = vadd.f32 %v2646_v34, %v1213_v38 }
 0x2e2   : > { %v1638_v41 = vpop.f32.mrf.mxu2 }
 0x2e3   : > { %v1291_v42 = vmax.f32 %v1214_v40, 0.0  ;;  %v1639_v43 = vadd.f32 %v2412_v39, %v1638_v41 }
 0x2e5   : > { %1749 = vst.msk [vmem:[%s2420_s8 + $0x148] sm:$0xff] %vm1707_vm2, %v1639_v43  ;;  %2022 = vmatmul.msk.f32.gmra.mxu3 %vm354_vm0, %v1291_v42 }
 0x2e8   : > { %v1216_v44 = vpop.f32.mrf.mxu3 }
 0x2e9   : > { %v1217_v45 = vadd.f32 %v2646_v34, %v1216_v44 }
 0x2ea   : > { %v1641_v46 = vpop.f32.mrf.mxu2 }
 0x2eb   : > { %v1292_v47 = vmax.f32 %v1217_v45, 0.0  ;;  %v1642_v48 = vadd.f32 %v2412_v39, %v1641_v46 }
 0x2ed   : > { %1750 = vst.msk [vmem:[%s2420_s8 + $0x150] sm:$0xff] %vm1707_vm2, %v1642_v48  ;;  %2023 = vmatmul.msk.f32.gmra.mxu3 %vm354_vm0, %v1292_v47 }
 0x2f0   : > { %v1219_v49 = vpop.f32.mrf.mxu3 }
 0x2f1   : > { %v1220_v50 = vadd.f32 %v2646_v34, %v1219_v49 }
 0x2f2   : > { %v1644_v51 = vpop.f32.mrf.mxu2 }
 0x2f3   : > { %v1293_v52 = vmax.f32 %v1220_v50, 0.0  ;;  %v1645_v53 = vadd.f32 %v2412_v39, %v1644_v51 }
 0x2f5   : > { %1751 = vst.msk [vmem:[%s2420_s8 + $0x158] sm:$0xff] %vm1707_vm2, %v1645_v53  ;;  %2024 = vmatmul.msk.f32.gmra.mxu3 %vm354_vm0, %v1293_v52 }
 0x2f8   : > { %v1222_v54 = vpop.f32.mrf.mxu3 }
 0x2f9   : > { %v1223_v28 = vadd.f32 %v2646_v34, %v1222_v54 }
 0x2fa   : > { %v1647_v55 = vpop.f32.mrf.mxu2 }
 0x2fb   : > { %v1294_v56 = vmax.f32 %v1223_v28, 0.0  ;;  %v1648_v57 = vadd.f32 %v2412_v39, %v1647_v55 }
 0x2fd   : > { %1752 = vst.msk [vmem:[%s2420_s8 + $0x160] sm:$0xff] %vm1707_vm2, %v1648_v57  ;;  %2025 = vmatmul.msk.f32.gmra.mxu3 %vm354_vm0, %v1294_v56 }
 0x300   : > { %v1225_v58 = vpop.f32.mrf.mxu3 }
 0x301   : > { %v1226_v59 = vadd.f32 %v2646_v34, %v1225_v58 }
 0x302   : > { %v1650_v60 = vpop.f32.mrf.mxu2 }
 0x303   : > { %v1295_v61 = vmax.f32 %v1226_v59, 0.0  ;;  %v1651_v62 = vadd.f32 %v2412_v39, %v1650_v60 }
 0x305   : > { %1753 = vst.msk [vmem:[%s2420_s8 + $0x168] sm:$0xff] %vm1707_vm2, %v1651_v62  ;;  %2026 = vmatmul.msk.f32.gmra.mxu3 %vm354_vm0, %v1295_v61 }
 0x308   : > { %v1228_v63 = vpop.f32.mrf.mxu3 }
 0x309   : > { %v1229_v0 = vadd.f32 %v2646_v34, %v1228_v63 }
 0x30a   : > { %v1653_v1 = vpop.f32.mrf.mxu2 }
 0x30b   : > { %v1296_v2 = vmax.f32 %v1229_v0, 0.0  ;;  %v1654_v3 = vadd.f32 %v2412_v39, %v1653_v1 }
 0x30d   : > { %1754 = vst.msk [vmem:[%s2420_s8 + $0x170] sm:$0xff] %vm1707_vm2, %v1654_v3  ;;  %2027 = vmatmul.msk.f32.gmra.mxu3 %vm354_vm0, %v1296_v2 }
 0x310   : > { %v1231_v4 = vpop.f32.mrf.mxu3 }
 0x311   : > { %v1232_v5 = vadd.f32 %v2646_v34, %v1231_v4 }
 0x312   : > { %v1656_v6 = vpop.f32.mrf.mxu2 }
 0x313   : > { %v1297_v7 = vmax.f32 %v1232_v5, 0.0  ;;  %v1657_v8 = vadd.f32 %v2412_v39, %v1656_v6 }
 0x315   : > { %1755 = vst.msk [vmem:[%s2420_s8 + $0x178] sm:$0xff] %vm1707_vm2, %v1657_v8  ;;  %2028 = vmatmul.msk.f32.gmra.mxu3 %vm354_vm0, %v1297_v7 }
 0x320   : > { %v1659_v9 = vpop.f32.mrf.mxu2 }
 0x321   : > { %v1660_v10 = vadd.f32 %v2412_v39, %v1659_v9 }
 0x323   : > { %1756 = vst.msk [vmem:[%s2420_s8 + $0x180] sm:$0xff] %vm1707_vm2, %v1660_v10 }
 0x328   : > { %v1662_v11 = vpop.f32.mrf.mxu3 }
 0x329   : > { %v1663_v13 = vadd.f32 %v2412_v39, %v1662_v11 }
 0x32b   : > { %1757 = vst.msk [vmem:[%s2420_s8 + $0x188] sm:$0xff] %vm1707_vm2, %v1663_v13 }
 0x330   : > { %v1665_v34 = vpop.f32.mrf.mxu3 }
 0x331   : > { %v1666_v17 = vadd.f32 %v2412_v39, %v1665_v34 }
 0x333   : > { %1758 = vst.msk [vmem:[%s2420_s8 + $0x190] sm:$0xff] %vm1707_vm2, %v1666_v17 }
 0x338   : > { %v1668_v12 = vpop.f32.mrf.mxu3 }
 0x339   : > { %v1669_v19 = vadd.f32 %v2412_v39, %v1668_v12 }
 0x33b   : > { %1759 = vst.msk [vmem:[%s2420_s8 + $0x198] sm:$0xff] %vm1707_vm2, %v1669_v19 }
 0x340   : > { %v1671_v14 = vpop.f32.mrf.mxu3 }
 0x341   : > { %v1672_v15 = vadd.f32 %v2412_v39, %v1671_v14 }
 0x343   : > { %1760 = vst.msk [vmem:[%s2420_s8 + $0x1a0] sm:$0xff] %vm1707_vm2, %v1672_v15 }
 0x348   : > { %v1674_v16 = vpop.f32.mrf.mxu3 }
 0x349   : > { %v1675_v20 = vadd.f32 %v2412_v39, %v1674_v16 }
 0x34b   : > { %1761 = vst.msk [vmem:[%s2420_s8 + $0x1a8] sm:$0xff] %vm1707_vm2, %v1675_v20 }
 0x350   : > { %v1677_v18 = vpop.f32.mrf.mxu3 }
 0x351   : > { %v1678_v21 = vadd.f32 %v2412_v39, %v1677_v18 }
 0x353   : > { %1762 = vst.msk [vmem:[%s2420_s8 + $0x1b0] sm:$0xff] %vm1707_vm2, %v1678_v21 }
 0x358   : > { %v1680_v22 = vpop.f32.mrf.mxu3 }
 0x359   : > { %v1681_v23 = vadd.f32 %v2412_v39, %v1680_v22 }
 0x35b   : > { %1763 = vst.msk [vmem:[%s2420_s8 + $0x1b8] sm:$0xff] %vm1707_vm2, %v1681_v23 }
 0x360   : > { %v1683_v24 = vpop.f32.mrf.mxu3 }
 0x361   : > { %v1684_v25 = vadd.f32 %v2412_v39, %v1683_v24 }
 0x363   : > { %1764 = vst.msk [vmem:[%s2420_s8 + $0x1c0] sm:$0xff] %vm1707_vm2, %v1684_v25 }
 0x368   : > { %v1686_v26 = vpop.f32.mrf.mxu3 }
 0x369   : > { %v1687_v27 = vadd.f32 %v2412_v39, %v1686_v26 }
 0x36b   : > { %1765 = vst.msk [vmem:[%s2420_s8 + $0x1c8] sm:$0xff] %vm1707_vm2, %v1687_v27 }
 0x370   : > { %v1689_v29 = vpop.f32.mrf.mxu3 }
 0x371   : > { %v1690_v30 = vadd.f32 %v2412_v39, %v1689_v29 }
 0x373   : > { %1766 = vst.msk [vmem:[%s2420_s8 + $0x1d0] sm:$0xff] %vm1707_vm2, %v1690_v30 }
 0x378   : > { %v1692_v31 = vpop.f32.mrf.mxu3 }
 0x379   : > { %v1693_v33 = vadd.f32 %v2060_v32, %v1692_v31 }
 0x37b   : > { %1767 = vst.msk [vmem:[%s2420_s8 + $0x1d8] sm:$0xff] %vm1707_vm2, %v1693_v33 }
 0x380   : > { %v1695_v35 = vpop.f32.mrf.mxu3 }
 0x381   : > { %v1696_v36 = vadd.f32 %v2060_v32, %v1695_v35 }
 0x383   : > { %1768 = vst.msk [vmem:[%s2420_s8 + $0x1e0] sm:$0xff] %vm1707_vm2, %v1696_v36 }
 0x388   : > { %v1698_v37 = vpop.f32.mrf.mxu3 }
 0x389   : > { %v1699_v38 = vadd.f32 %v2060_v32, %v1698_v37 }
 0x38b   : > { %1769 = vst.msk [vmem:[%s2420_s8 + $0x1e8] sm:$0xff] %vm1707_vm2, %v1699_v38 }
 0x390   : > { %v1701_v39 = vpop.f32.mrf.mxu3 }
 0x391   : > { %v1702_v40 = vadd.f32 %v2060_v32, %v1701_v39 }
 0x393   : > { %1770 = vst.msk [vmem:[%s2420_s8 + $0x1f0] sm:$0xff] %vm1707_vm2, %v1702_v40 }
 0x398   : > { %v1704_v41 = vpop.f32.mrf.mxu3 }
 0x399   : > { %v1705_v42 = vadd.f32 %v2060_v32, %v1704_v41 }
 0x39b   : > { %1771 = vst.msk [vmem:[%s2420_s8 + $0x1f8] sm:$0xff] %vm1707_vm2, %v1705_v42 }
 0x39c PF: > { %s17_s24 = sadd.s32 1, %s2067_s24  }
 0x39d   : > { %p14_p4 = scmp.ge.s32.totalorder %s17_s24, 4  }
 0x39f   :  { %16 = sbr.rel (!%p14_p4) target bundleno = 1 (0x1), region = 78 }

</bundles_post_ra>
